<compile_context>
chip_gen: v7x
topology: tpu7x:2x2x1
jax: 0.10.0
libtpu: 0.0.40
codegen_flags: <defaults>
</compile_context>

<pallas_src>
import jax
import jax.numpy as jnp
from jax.experimental import pallas as pl
from jax.experimental.pallas import tpu as pltpu

EMB_DIM = 300          # hard-coded embedding_dim=300 in the PyTorch module
NUM_LAYERS = 2         # TraceNet focus layers (config.num_hidden_layers)
NUM_LABELS = 3         # config.num_labels
NUM_WORDS = 64         # config.num_words (small synthetic vocab)

TARGET_MXU_ROWS = 512  # aim for ~512 (b_tile*S) MXU rows per grid step


def _cdiv(a, b):
    return (a + b - 1) // b


def _round_up(a, b):
    return _cdiv(a, b) * b


def _device_info():
    """(num_tensorcores, vmem_limit_bytes) from the device kind string."""
    kind = ""
    try:
        kind = jax.devices()[0].device_kind.lower()
    except Exception:
        pass
    two_core = any(tag in kind for tag in ("v7", "tpu7", "7x"))
    vmem_limit = (40 << 20) if two_core else (64 << 20)   # v7x has 64 MiB physical
    return (2 if two_core else 1), vmem_limit


def _vmem_bytes(bt, s, s_pad, hp, vp, nlp, nl_layers):
    """Rough estimate of live VMEM for one grid step (activations + weights)."""
    rows = bt * s
    act = rows * hp * 4 * 6                    # h, h_sum, weighted, nh, temps (f32)
    onehot = rows * vp * 6                     # i32 iota + bf16 one-hot
    itemw_tmp = bt * s * s_pad * 4 * 2         # transposed item-weight temp
    io = 2 * (3 * rows * 4) + 2 * (bt * nlp * 4 + nl_layers * bt * s_pad * 4)
    consts = 2 * (vp * hp * 2 + nl_layers * hp * hp * 2 + 2 * nl_layers * hp * 4
                  + hp * hp * 2 + hp * 4 + hp * nlp * 4 + nlp * 4)
    return act + onehot + itemw_tmp + io + consts


def _tracenet_kernel(ids_ref, mask_ref, w0_ref, table_ref,
                     wloc_ref, wff_ref, bff_ref,
                     wd1_ref, bd1_ref, wd2_ref, bd2_ref,
                     logits_ref, itemw_ref):
    """One batch tile: embedding lookup + focus layers + layer mean + head."""
    bt, s, _ = mask_ref.shape
    vp, hp = table_ref.shape
    num_layers = wff_ref.shape[0]
    s_pad = itemw_ref.shape[-1]
    mm_dtype = wff_ref.dtype          # bf16 MXU input dtype (f32 accumulation)

    # --- embedding gather as a one-hot MXU matmul (bf16 inputs, exact 0/1
    #     one-hot; avoids the gather and the (B,S,H) f32 HBM round trip) ---
    ids = ids_ref[...]                                              # (bt,s,1) i32
    vocab_iota = jax.lax.broadcasted_iota(jnp.int32, (bt, s, vp), 2)
    one_hot = (vocab_iota == ids).astype(mm_dtype)                  # (bt,s,vp)
    h = jnp.dot(one_hot.reshape(bt * s, vp), table_ref[...],
                preferred_element_type=jnp.float32).reshape(bt, s, hp)

    mask = mask_ref[...]                                            # (bt,s,1)
    w = w0_ref[...]                                                 # (bt,s,1)

    h_sum = jnp.zeros_like(h)          # accumulates hidden_states[1:]
    w_layers = []
    for l in range(num_layers):
        # --- locator: score each token, trace & renormalize item weights ---
        u = wloc_ref[l]                                             # (1, hp)
        score = jax.nn.sigmoid(jnp.sum(h * u, axis=-1, keepdims=True))  # (bt,s,1)
        w = w * score * mask
        # exact reciprocal: item weights are a user-visible output
        w = w / (jnp.sum(w, axis=1, keepdims=True) + 1e-9)
        # --- focus update: weight tokens, residual tanh FFN (batched MXU) ---
        weighted = (h * (w * float(s))).reshape(bt * s, hp)         # (bt*s, hp)
        nh = jnp.tanh(
            jnp.dot(weighted.astype(mm_dtype), wff_ref[l],
                    preferred_element_type=jnp.float32) + bff_ref[l])
        h = nh.reshape(bt, s, hp) + h
        h_sum = h_sum + h
        w_layers.append(w)

    # Per-layer item weights written as (L, bt, S_pad) — layers on an outer
    # dim, sequence lane-dense — instead of a (bt, S, 128) slab.  The
    # sublane->lane move is done with a selector multiply + axis-1 reduction
    # (sel[i,j] = [i == j]), which keeps everything in well-supported ops.
    sel = (jax.lax.broadcasted_iota(jnp.int32, (1, s, s_pad), 1)
           == jax.lax.broadcasted_iota(jnp.int32, (1, s, s_pad), 2)
           ).astype(jnp.float32)                                    # (1,s,s_pad)
    for l in range(num_layers):
        row = jnp.sum(w_layers[l] * sel, axis=1)                    # (bt, s_pad)
        itemw_ref[0, l] = row

    # torch.mean(torch.stack(all_hidden_states[1:]), dim=0)
    h_mean = h_sum * (1.0 / float(num_layers))                      # (bt,s,hp)

    # --- discriminator head: mean-pool per sequence, batched dense->tanh->out ---
    pooled = jnp.mean(h_mean, axis=1)                               # (bt, hp)
    d1 = jnp.tanh(
        jnp.dot(pooled.astype(mm_dtype), wd1_ref[...],
                preferred_element_type=jnp.float32) + bd1_ref[...])
    logits = jnp.dot(d1, wd2_ref[...],
                     preferred_element_type=jnp.float32) + bd2_ref[...]
    logits_ref[0] = logits                                          # (bt, NLP)


def tracenet_forward(params, input_ids, attention_mask, labels=None,
                     item_weights=None, proactive_masking=None):
    table = params["word_embedding"].astype(jnp.float32)
    V, H = table.shape
    L = params["wff"].shape[0]
    NL = params["wd2"].shape[-1]
    B, S = input_ids.shape

    mm_dtype = jnp.bfloat16        # bf16 MXU inputs on every generation (f32 acc)

    HP = _round_up(H, 128)         # 300 -> 384  (zero padding is numerically inert)
    VP = _round_up(V, 128)         # vocab pad for the one-hot matmul
    NLP = _round_up(NL, 128)       # lane-dense logits slab
    S_PAD = _round_up(S, 128)      # lane-dense item-weight rows

    # --- batch tiling: ~512 MXU rows per grid step, capped by a VMEM estimate;
    #     force an even "parallel" split only on 2-TensorCore parts (v7x). ---
    num_tcs, vmem_limit = _device_info()
    budget = vmem_limit // 2

    b_tile = max(1, min(B, _cdiv(TARGET_MXU_ROWS, S)))
    while b_tile > 1 and _vmem_bytes(b_tile, S, S_PAD, HP, VP, NLP, L) > budget:
        b_tile = max(1, b_tile // 2)
    nb = _cdiv(B, b_tile)
    if num_tcs > 1 and B > 1 and nb % num_tcs != 0:
        nb = _round_up(max(nb, num_tcs), num_tcs)
        b_tile = _cdiv(B, nb)
        nb = _cdiv(B, b_tile)
    Bp = nb * b_tile

    # --- host-side padding / glue ---
    ids_p = jnp.pad(input_ids.astype(jnp.int32),
                    ((0, Bp - B), (0, 0))).reshape(Bp, S, 1)

    mask = attention_mask.astype(jnp.float32)
    if proactive_masking is not None:
        mask = mask * proactive_masking.astype(jnp.float32).reshape(B, S)
    mask_p = jnp.pad(mask, ((0, Bp - B), (0, 0))).reshape(Bp, S, 1)

    if item_weights is None:
        w0_p = mask_p / jnp.maximum(jnp.sum(mask_p, axis=1, keepdims=True), 1.0)
    else:
        w0 = item_weights.astype(jnp.float32).reshape(B, S)
        w0_p = jnp.pad(w0, ((0, Bp - B), (0, 0))).reshape(Bp, S, 1)

    table_p = jnp.pad(table, ((0, VP - V), (0, HP - H))).astype(mm_dtype)
    wloc_p = jnp.pad(params["wloc"].astype(jnp.float32),
                     ((0, 0), (0, 0), (0, HP - H)))
    wff_p = jnp.pad(params["wff"].astype(jnp.float32),
                    ((0, 0), (0, HP - H), (0, HP - H))).astype(mm_dtype)
    bff_p = jnp.pad(params["bff"].astype(jnp.float32),
                    ((0, 0), (0, 0), (0, HP - H)))
    wd1_p = jnp.pad(params["wd1"].astype(jnp.float32),
                    ((0, HP - H), (0, HP - H))).astype(mm_dtype)
    bd1_p = jnp.pad(params["bd1"].astype(jnp.float32), ((0, 0), (0, HP - H)))
    wd2_p = jnp.pad(params["wd2"].astype(jnp.float32),
                    ((0, HP - H), (0, NLP - NL)))
    bd2_p = jnp.pad(params["bd2"].astype(jnp.float32), ((0, 0), (0, NLP - NL)))

    batch3 = lambda b: (b, 0, 0)
    const2 = lambda b: (0, 0)
    const3 = lambda b: (0, 0, 0)

    logits_p, itemw_p = pl.pallas_call(
        _tracenet_kernel,
        grid=(nb,),
        in_specs=[
            pl.BlockSpec((b_tile, S, 1), batch3),     # token ids (int32)
            pl.BlockSpec((b_tile, S, 1), batch3),     # attention mask
            pl.BlockSpec((b_tile, S, 1), batch3),     # initial item weights
            pl.BlockSpec((VP, HP), const2),           # embedding table (bf16, resident)
            pl.BlockSpec((L, 1, HP), const3),         # locator vectors
            pl.BlockSpec((L, HP, HP), const3),        # focus FFN weights (bf16)
            pl.BlockSpec((L, 1, HP), const3),         # focus FFN biases
            pl.BlockSpec((HP, HP), const2),           # discriminator dense (bf16)
            pl.BlockSpec((1, HP), const2),            # discriminator dense bias
            pl.BlockSpec((HP, NLP), const2),          # discriminator out_proj
            pl.BlockSpec((1, NLP), const2),           # out_proj bias
        ],
        out_specs=(
            pl.BlockSpec((1, b_tile, NLP), lambda b: (b, 0, 0)),
            pl.BlockSpec((1, L, b_tile, S_PAD), lambda b: (b, 0, 0, 0)),
        ),
        out_shape=(
            jax.ShapeDtypeStruct((nb, b_tile, NLP), jnp.float32),
            jax.ShapeDtypeStruct((nb, L, b_tile, S_PAD), jnp.float32),
        ),
        compiler_params=pltpu.CompilerParams(
            dimension_semantics=("parallel",),
            vmem_limit_bytes=vmem_limit),
    )(ids_p, mask_p, w0_p, table_p, wloc_p, wff_p, bff_p,
      wd1_p, bd1_p, wd2_p, bd2_p)

    logits = logits_p.reshape(Bp, NLP)[:B, :NL]                    # (B, num_labels)
    itemw = jnp.transpose(itemw_p, (1, 0, 2, 3)).reshape(L, Bp, S_PAD)
    all_item_weights = itemw[:, :B, :S]                            # (L, B, S)

    outputs = (logits, jnp.float32(0.0))                           # L2_loss placeholder == 0.0
    if labels is not None:
        # CrossEntropyLoss (mean reduction) — tiny, kept in JAX glue.
        logp = jax.nn.log_softmax(logits, axis=-1)
        nll = -jnp.take_along_axis(logp, labels.reshape(-1, 1), axis=-1)
        outputs = outputs + (jnp.mean(nll),)
    outputs = outputs + (all_item_weights,)
    return outputs


def init_params(key, num_words=NUM_WORDS, num_labels=NUM_LABELS,
                num_layers=NUM_LAYERS, hidden=EMB_DIM):
    """Deterministic init mirroring _init_weights: N(0, 0.02) weights, zero biases."""
    ks = jax.random.split(key, 5)
    std = 0.02
    return {
        "word_embedding": std * jax.random.normal(ks[0], (num_words, hidden), jnp.float32),
        "wloc": std * jax.random.normal(ks[1], (num_layers, 1, hidden), jnp.float32),
        "wff": std * jax.random.normal(ks[2], (num_layers, hidden, hidden), jnp.float32),
        "bff": jnp.zeros((num_layers, 1, hidden), jnp.float32),
        "wd1": std * jax.random.normal(ks[3], (hidden, hidden), jnp.float32),
        "bd1": jnp.zeros((1, hidden), jnp.float32),
        "wd2": std * jax.random.normal(ks[4], (hidden, num_labels), jnp.float32),
        "bd2": jnp.zeros((1, num_labels), jnp.float32),
    }


if __name__ == "__main__":
    key = jax.random.PRNGKey(0)
    k_par, k_ids = jax.random.split(key)

    B, S = 2, 8
    params = init_params(k_par)

    input_ids = jax.random.randint(k_ids, (B, S), 0, NUM_WORDS, dtype=jnp.int32)
    lengths = jnp.array([S, 5], dtype=jnp.int32)
    attention_mask = (jnp.arange(S)[None, :] < lengths[:, None]).astype(jnp.int32)
    labels = jnp.array([0, 2], dtype=jnp.int32)

    outs = tracenet_forward(params, input_ids, attention_mask, labels=labels)
    jax.block_until_ready(outs)

    logits, l2_loss, ce_loss, all_item_weights = outs
    assert logits.shape == (B, NUM_LABELS)
    assert all_item_weights.shape == (NUM_LAYERS, B, S)
    assert ce_loss.shape == ()
    assert bool(jnp.all(jnp.isfinite(logits)))
    assert bool(jnp.all(jnp.isfinite(all_item_weights)))
    print("KERNEL_OK")
</pallas_src>

<mosaic_0001>
module attributes {stable_mosaic.version = 11 : i64} {
  func.func @_tracenet_kernel(%arg0: i32, %arg1: memref<2x8x1xi32, #tpu.memory_space<vmem>>, %arg2: memref<2x8x1xf32, #tpu.memory_space<vmem>>, %arg3: memref<2x8x1xf32, #tpu.memory_space<vmem>>, %arg4: memref<128x384xbf16, #tpu.memory_space<vmem>>, %arg5: memref<2x1x384xf32, #tpu.memory_space<vmem>>, %arg6: memref<2x384x384xbf16, #tpu.memory_space<vmem>>, %arg7: memref<2x1x384xf32, #tpu.memory_space<vmem>>, %arg8: memref<384x384xbf16, #tpu.memory_space<vmem>>, %arg9: memref<1x384xf32, #tpu.memory_space<vmem>>, %arg10: memref<384x128xf32, #tpu.memory_space<vmem>>, %arg11: memref<1x128xf32, #tpu.memory_space<vmem>>, %arg12: memref<1x2x128xf32, #tpu.memory_space<vmem>>, %arg13: memref<1x2x2x128xf32, #tpu.memory_space<vmem>>) attributes {dimension_semantics = [#tpu.dimension_semantics<parallel>], iteration_bounds = array<i64: 1>, scalar_prefetch = 0 : i64, scratch_operands = 0 : i64, tpu.core_type = #tpu.core_type<tc>, window_params = [{transform_indices = @transform_0, window_bounds = array<i64: 2, 8, 1>}, {transform_indices = @transform_1, window_bounds = array<i64: 2, 8, 1>}, {transform_indices = @transform_2, window_bounds = array<i64: 2, 8, 1>}, {pipeline_mode = #tpu.pipeline_mode<synchronous>, transform_indices = @transform_3, window_bounds = array<i64: 128, 384>}, {pipeline_mode = #tpu.pipeline_mode<synchronous>, transform_indices = @transform_4, window_bounds = array<i64: 2, 1, 384>}, {pipeline_mode = #tpu.pipeline_mode<synchronous>, transform_indices = @transform_5, window_bounds = array<i64: 2, 384, 384>}, {pipeline_mode = #tpu.pipeline_mode<synchronous>, transform_indices = @transform_6, window_bounds = array<i64: 2, 1, 384>}, {pipeline_mode = #tpu.pipeline_mode<synchronous>, transform_indices = @transform_7, window_bounds = array<i64: 384, 384>}, {pipeline_mode = #tpu.pipeline_mode<synchronous>, transform_indices = @transform_8, window_bounds = array<i64: 1, 384>}, {pipeline_mode = #tpu.pipeline_mode<synchronous>, transform_indices = @transform_9, window_bounds = array<i64: 384, 128>}, {pipeline_mode = #tpu.pipeline_mode<synchronous>, transform_indices = @transform_10, window_bounds = array<i64: 1, 128>}, {transform_indices = @transform_11, window_bounds = array<i64: 1, 2, 128>}, {transform_indices = @transform_12, window_bounds = array<i64: 1, 2, 2, 128>}]} {
    %c0 = arith.constant 0 : index
    %c0_0 = arith.constant 0 : index
    %c0_1 = arith.constant 0 : index
    %0 = vector.load %arg1[%c0, %c0_0, %c0_1] : memref<2x8x1xi32, #tpu.memory_space<vmem>>, vector<2x8x1xi32>
    %1 = tpu.iota {dimensions = array<i32: 2>} : vector<2x8x128xi32>
    %2 = vector.broadcast %0 : vector<2x8x1xi32> to vector<2x8x128xi32>
    %3 = arith.cmpi eq, %1, %2 : vector<2x8x128xi32>
    %4 = arith.extui %3 : vector<2x8x128xi1> to vector<2x8x128xi32>
    %5 = arith.sitofp %4 : vector<2x8x128xi32> to vector<2x8x128xf32>
    %6 = arith.truncf %5 : vector<2x8x128xf32> to vector<2x8x128xbf16>
    %7 = vector.shape_cast %6 : vector<2x8x128xbf16> to vector<16x128xbf16>
    %c0_2 = arith.constant 0 : index
    %c0_3 = arith.constant 0 : index
    %8 = vector.load %arg4[%c0_2, %c0_3] : memref<128x384xbf16, #tpu.memory_space<vmem>>, vector<128x384xbf16>
    %cst = arith.constant dense<0.000000e+00> : vector<16x384xf32>
    %9 = tpu.matmul %7, %8, %cst {dimension_numbers = #tpu.dot_dimension_numbers<[1], [0], [0], [1], [0, 0, 1, 1], [], []>} : vector<16x128xbf16>, vector<128x384xbf16>, vector<16x384xf32> -> vector<16x384xf32>
    %10 = vector.shape_cast %9 : vector<16x384xf32> to vector<2x8x384xf32>
    %c0_4 = arith.constant 0 : index
    %c0_5 = arith.constant 0 : index
    %c0_6 = arith.constant 0 : index
    %11 = vector.load %arg2[%c0_4, %c0_5, %c0_6] : memref<2x8x1xf32, #tpu.memory_space<vmem>>, vector<2x8x1xf32>
    %c0_7 = arith.constant 0 : index
    %c0_8 = arith.constant 0 : index
    %c0_9 = arith.constant 0 : index
    %12 = vector.load %arg3[%c0_7, %c0_8, %c0_9] : memref<2x8x1xf32, #tpu.memory_space<vmem>>, vector<2x8x1xf32>
    %cst_10 = arith.constant 0.000000e+00 : f32
    %13 = vector.broadcast %cst_10 : f32 to vector<2x8x384xf32>
    %c0_11 = arith.constant 0 : index
    %c0_12 = arith.constant 0 : index
    %c0_13 = arith.constant 0 : index
    %14 = vector.load %arg5[%c0_11, %c0_12, %c0_13] : memref<2x1x384xf32, #tpu.memory_space<vmem>>, vector<1x1x384xf32>
    %15 = vector.shape_cast %14 : vector<1x1x384xf32> to vector<1x384xf32>
    %16 = vector.shape_cast %15 : vector<1x384xf32> to vector<1x1x384xf32>
    %17 = vector.broadcast %16 : vector<1x1x384xf32> to vector<2x8x384xf32>
    %18 = arith.mulf %10, %17 : vector<2x8x384xf32>
    %cst_14 = arith.constant dense<0.000000e+00> : vector<2x8xf32>
    %19 = vector.multi_reduction <add>, %18, %cst_14 [2] : vector<2x8x384xf32> to vector<2x8xf32>
    %20 = vector.shape_cast %19 : vector<2x8xf32> to vector<2x8x1xf32>
    %21 = arith.negf %20 : vector<2x8x1xf32>
    %22 = math.exp %21 : vector<2x8x1xf32>
    %cst_15 = arith.constant 1.000000e+00 : f32
    %23 = vector.broadcast %cst_15 : f32 to vector<2x8x1xf32>
    %24 = arith.addf %23, %22 : vector<2x8x1xf32>
    %25 = arith.divf %23, %24 : vector<2x8x1xf32>
    %26 = arith.mulf %12, %25 : vector<2x8x1xf32>
    %27 = arith.mulf %26, %11 : vector<2x8x1xf32>
    %cst_16 = arith.constant dense<0.000000e+00> : vector<2x1xf32>
    %28 = vector.multi_reduction <add>, %27, %cst_16 [1] : vector<2x8x1xf32> to vector<2x1xf32>
    %29 = vector.shape_cast %28 : vector<2x1xf32> to vector<2x1x1xf32>
    %cst_17 = arith.constant 9.99999971E-10 : f32
    %30 = vector.broadcast %cst_17 : f32 to vector<2x1x1xf32>
    %31 = arith.addf %29, %30 : vector<2x1x1xf32>
    %32 = vector.broadcast %31 : vector<2x1x1xf32> to vector<2x8x1xf32>
    %33 = arith.divf %27, %32 : vector<2x8x1xf32>
    %cst_18 = arith.constant 8.000000e+00 : f32
    %34 = vector.broadcast %cst_18 : f32 to vector<2x8x1xf32>
    %35 = arith.mulf %33, %34 : vector<2x8x1xf32>
    %36 = vector.broadcast %35 : vector<2x8x1xf32> to vector<2x8x384xf32>
    %37 = arith.mulf %10, %36 : vector<2x8x384xf32>
    %38 = vector.shape_cast %37 : vector<2x8x384xf32> to vector<16x384xf32>
    %39 = arith.truncf %38 : vector<16x384xf32> to vector<16x384xbf16>
    %c0_19 = arith.constant 0 : index
    %c0_20 = arith.constant 0 : index
    %c0_21 = arith.constant 0 : index
    %40 = vector.load %arg6[%c0_19, %c0_20, %c0_21] : memref<2x384x384xbf16, #tpu.memory_space<vmem>>, vector<1x384x384xbf16>
    %41 = vector.shape_cast %40 : vector<1x384x384xbf16> to vector<384x384xbf16>
    %cst_22 = arith.constant dense<0.000000e+00> : vector<16x384xf32>
    %42 = tpu.matmul %39, %41, %cst_22 {dimension_numbers = #tpu.dot_dimension_numbers<[1], [0], [0], [1], [0, 0, 1, 1], [], []>} : vector<16x384xbf16>, vector<384x384xbf16>, vector<16x384xf32> -> vector<16x384xf32>
    %c0_23 = arith.constant 0 : index
    %c0_24 = arith.constant 0 : index
    %c0_25 = arith.constant 0 : index
    %43 = vector.load %arg7[%c0_23, %c0_24, %c0_25] : memref<2x1x384xf32, #tpu.memory_space<vmem>>, vector<1x1x384xf32>
    %44 = vector.shape_cast %43 : vector<1x1x384xf32> to vector<1x384xf32>
    %45 = vector.broadcast %44 : vector<1x384xf32> to vector<16x384xf32>
    %46 = arith.addf %42, %45 : vector<16x384xf32>
    %47 = math.tanh %46 : vector<16x384xf32>
    %48 = vector.shape_cast %47 : vector<16x384xf32> to vector<2x8x384xf32>
    %49 = arith.addf %48, %10 : vector<2x8x384xf32>
    %50 = arith.addf %13, %49 : vector<2x8x384xf32>
    %c1 = arith.constant 1 : index
    %c0_26 = arith.constant 0 : index
    %c0_27 = arith.constant 0 : index
    %51 = vector.load %arg5[%c1, %c0_26, %c0_27] : memref<2x1x384xf32, #tpu.memory_space<vmem>>, vector<1x1x384xf32>
    %52 = vector.shape_cast %51 : vector<1x1x384xf32> to vector<1x384xf32>
    %53 = vector.shape_cast %52 : vector<1x384xf32> to vector<1x1x384xf32>
    %54 = vector.broadcast %53 : vector<1x1x384xf32> to vector<2x8x384xf32>
    %55 = arith.mulf %49, %54 : vector<2x8x384xf32>
    %cst_28 = arith.constant dense<0.000000e+00> : vector<2x8xf32>
    %56 = vector.multi_reduction <add>, %55, %cst_28 [2] : vector<2x8x384xf32> to vector<2x8xf32>
    %57 = vector.shape_cast %56 : vector<2x8xf32> to vector<2x8x1xf32>
    %58 = arith.negf %57 : vector<2x8x1xf32>
    %59 = math.exp %58 : vector<2x8x1xf32>
    %cst_29 = arith.constant 1.000000e+00 : f32
    %60 = vector.broadcast %cst_29 : f32 to vector<2x8x1xf32>
    %61 = arith.addf %60, %59 : vector<2x8x1xf32>
    %62 = arith.divf %60, %61 : vector<2x8x1xf32>
    %63 = arith.mulf %33, %62 : vector<2x8x1xf32>
    %64 = arith.mulf %63, %11 : vector<2x8x1xf32>
    %cst_30 = arith.constant dense<0.000000e+00> : vector<2x1xf32>
    %65 = vector.multi_reduction <add>, %64, %cst_30 [1] : vector<2x8x1xf32> to vector<2x1xf32>
    %66 = vector.shape_cast %65 : vector<2x1xf32> to vector<2x1x1xf32>
    %cst_31 = arith.constant 9.99999971E-10 : f32
    %67 = vector.broadcast %cst_31 : f32 to vector<2x1x1xf32>
    %68 = arith.addf %66, %67 : vector<2x1x1xf32>
    %69 = vector.broadcast %68 : vector<2x1x1xf32> to vector<2x8x1xf32>
    %70 = arith.divf %64, %69 : vector<2x8x1xf32>
    %cst_32 = arith.constant 8.000000e+00 : f32
    %71 = vector.broadcast %cst_32 : f32 to vector<2x8x1xf32>
    %72 = arith.mulf %70, %71 : vector<2x8x1xf32>
    %73 = vector.broadcast %72 : vector<2x8x1xf32> to vector<2x8x384xf32>
    %74 = arith.mulf %49, %73 : vector<2x8x384xf32>
    %75 = vector.shape_cast %74 : vector<2x8x384xf32> to vector<16x384xf32>
    %76 = arith.truncf %75 : vector<16x384xf32> to vector<16x384xbf16>
    %c1_33 = arith.constant 1 : index
    %c0_34 = arith.constant 0 : index
    %c0_35 = arith.constant 0 : index
    %77 = vector.load %arg6[%c1_33, %c0_34, %c0_35] : memref<2x384x384xbf16, #tpu.memory_space<vmem>>, vector<1x384x384xbf16>
    %78 = vector.shape_cast %77 : vector<1x384x384xbf16> to vector<384x384xbf16>
    %cst_36 = arith.constant dense<0.000000e+00> : vector<16x384xf32>
    %79 = tpu.matmul %76, %78, %cst_36 {dimension_numbers = #tpu.dot_dimension_numbers<[1], [0], [0], [1], [0, 0, 1, 1], [], []>} : vector<16x384xbf16>, vector<384x384xbf16>, vector<16x384xf32> -> vector<16x384xf32>
    %c1_37 = arith.constant 1 : index
    %c0_38 = arith.constant 0 : index
    %c0_39 = arith.constant 0 : index
    %80 = vector.load %arg7[%c1_37, %c0_38, %c0_39] : memref<2x1x384xf32, #tpu.memory_space<vmem>>, vector<1x1x384xf32>
    %81 = vector.shape_cast %80 : vector<1x1x384xf32> to vector<1x384xf32>
    %82 = vector.broadcast %81 : vector<1x384xf32> to vector<16x384xf32>
    %83 = arith.addf %79, %82 : vector<16x384xf32>
    %84 = math.tanh %83 : vector<16x384xf32>
    %85 = vector.shape_cast %84 : vector<16x384xf32> to vector<2x8x384xf32>
    %86 = arith.addf %85, %49 : vector<2x8x384xf32>
    %87 = arith.addf %50, %86 : vector<2x8x384xf32>
    %88 = tpu.iota {dimensions = array<i32: 1>} : vector<1x8x128xi32>
    %89 = tpu.iota {dimensions = array<i32: 2>} : vector<1x8x128xi32>
    %90 = arith.cmpi eq, %88, %89 : vector<1x8x128xi32>
    %91 = arith.extui %90 : vector<1x8x128xi1> to vector<1x8x128xi32>
    %92 = arith.sitofp %91 : vector<1x8x128xi32> to vector<1x8x128xf32>
    %93 = vector.broadcast %33 : vector<2x8x1xf32> to vector<2x8x128xf32>
    %94 = vector.broadcast %92 : vector<1x8x128xf32> to vector<2x8x128xf32>
    %95 = arith.mulf %93, %94 : vector<2x8x128xf32>
    %cst_40 = arith.constant dense<0.000000e+00> : vector<2x128xf32>
    %96 = vector.multi_reduction <add>, %95, %cst_40 [1] : vector<2x8x128xf32> to vector<2x128xf32>
    %c0_41 = arith.constant 0 : index
    %c0_42 = arith.constant 0 : index
    %c0_43 = arith.constant 0 : index
    %c0_44 = arith.constant 0 : index
    %97 = vector.load %arg13[%c0_41, %c0_42, %c0_43, %c0_44] : memref<1x2x2x128xf32, #tpu.memory_space<vmem>>, vector<1x1x2x128xf32>
    %98 = vector.shape_cast %97 : vector<1x1x2x128xf32> to vector<2x128xf32>
    %99 = vector.shape_cast %96 : vector<2x128xf32> to vector<1x1x2x128xf32>
    tpu.vector_store %arg13[%c0_41, %c0_42, %c0_43, %c0_44], %99 {strides = array<i32>} : memref<1x2x2x128xf32, #tpu.memory_space<vmem>>, vector<1x1x2x128xf32>,
    %100 = vector.broadcast %70 : vector<2x8x1xf32> to vector<2x8x128xf32>
    %101 = vector.broadcast %92 : vector<1x8x128xf32> to vector<2x8x128xf32>
    %102 = arith.mulf %100, %101 : vector<2x8x128xf32>
    %cst_45 = arith.constant dense<0.000000e+00> : vector<2x128xf32>
    %103 = vector.multi_reduction <add>, %102, %cst_45 [1] : vector<2x8x128xf32> to vector<2x128xf32>
    %c0_46 = arith.constant 0 : index
    %c1_47 = arith.constant 1 : index
    %c0_48 = arith.constant 0 : index
    %c0_49 = arith.constant 0 : index
    %104 = vector.load %arg13[%c0_46, %c1_47, %c0_48, %c0_49] : memref<1x2x2x128xf32, #tpu.memory_space<vmem>>, vector<1x1x2x128xf32>
    %105 = vector.shape_cast %104 : vector<1x1x2x128xf32> to vector<2x128xf32>
    %106 = vector.shape_cast %103 : vector<2x128xf32> to vector<1x1x2x128xf32>
    tpu.vector_store %arg13[%c0_46, %c1_47, %c0_48, %c0_49], %106 {strides = array<i32>} : memref<1x2x2x128xf32, #tpu.memory_space<vmem>>, vector<1x1x2x128xf32>,
    %cst_50 = arith.constant 5.000000e-01 : f32
    %107 = vector.broadcast %cst_50 : f32 to vector<2x8x384xf32>
    %108 = arith.mulf %87, %107 : vector<2x8x384xf32>
    %cst_51 = arith.constant dense<0.000000e+00> : vector<2x384xf32>
    %109 = vector.multi_reduction <add>, %108, %cst_51 [1] : vector<2x8x384xf32> to vector<2x384xf32>
    %cst_52 = arith.constant 8.000000e+00 : f32
    %110 = vector.broadcast %cst_52 : f32 to vector<2x384xf32>
    %111 = arith.divf %109, %110 : vector<2x384xf32>
    %112 = arith.truncf %111 : vector<2x384xf32> to vector<2x384xbf16>
    %c0_53 = arith.constant 0 : index
    %c0_54 = arith.constant 0 : index
    %113 = vector.load %arg8[%c0_53, %c0_54] : memref<384x384xbf16, #tpu.memory_space<vmem>>, vector<384x384xbf16>
    %cst_55 = arith.constant dense<0.000000e+00> : vector<2x384xf32>
    %114 = tpu.matmul %112, %113, %cst_55 {dimension_numbers = #tpu.dot_dimension_numbers<[1], [0], [0], [1], [0, 0, 1, 1], [], []>} : vector<2x384xbf16>, vector<384x384xbf16>, vector<2x384xf32> -> vector<2x384xf32>
    %c0_56 = arith.constant 0 : index
    %c0_57 = arith.constant 0 : index
    %115 = vector.load %arg9[%c0_56, %c0_57] : memref<1x384xf32, #tpu.memory_space<vmem>>, vector<1x384xf32>
    %116 = vector.broadcast %115 : vector<1x384xf32> to vector<2x384xf32>
    %117 = arith.addf %114, %116 : vector<2x384xf32>
    %118 = math.tanh %117 : vector<2x384xf32>
    %c0_58 = arith.constant 0 : index
    %c0_59 = arith.constant 0 : index
    %119 = vector.load %arg10[%c0_58, %c0_59] : memref<384x128xf32, #tpu.memory_space<vmem>>, vector<384x128xf32>
    %cst_60 = arith.constant dense<0.000000e+00> : vector<2x128xf32>
    %120 = tpu.matmul %118, %119, %cst_60 {dimension_numbers = #tpu.dot_dimension_numbers<[1], [0], [0], [1], [0, 0, 1, 1], [], []>} : vector<2x384xf32>, vector<384x128xf32>, vector<2x128xf32> -> vector<2x128xf32>
    %c0_61 = arith.constant 0 : index
    %c0_62 = arith.constant 0 : index
    %121 = vector.load %arg11[%c0_61, %c0_62] : memref<1x128xf32, #tpu.memory_space<vmem>>, vector<1x128xf32>
    %122 = vector.broadcast %121 : vector<1x128xf32> to vector<2x128xf32>
    %123 = arith.addf %120, %122 : vector<2x128xf32>
    %c0_63 = arith.constant 0 : index
    %c0_64 = arith.constant 0 : index
    %c0_65 = arith.constant 0 : index
    %124 = vector.load %arg12[%c0_63, %c0_64, %c0_65] : memref<1x2x128xf32, #tpu.memory_space<vmem>>, vector<1x2x128xf32>
    %125 = vector.shape_cast %124 : vector<1x2x128xf32> to vector<2x128xf32>
    %126 = vector.shape_cast %123 : vector<2x128xf32> to vector<1x2x128xf32>
    tpu.vector_store %arg12[%c0_63, %c0_64, %c0_65], %126 {strides = array<i32>} : memref<1x2x128xf32, #tpu.memory_space<vmem>>, vector<1x2x128xf32>,
    return
  }
  func.func @transform_0(%arg0: i32) -> (i32, i32, i32) {
    %c0_i32 = arith.constant 0 : i32
    %c0_i32_0 = arith.constant 0 : i32
    %c0_i32_1 = arith.constant 0 : i32
    return %arg0, %c0_i32, %c0_i32_0 : i32, i32, i32
  }
  func.func @transform_1(%arg0: i32) -> (i32, i32, i32) {
    %c0_i32 = arith.constant 0 : i32
    %c0_i32_0 = arith.constant 0 : i32
    %c0_i32_1 = arith.constant 0 : i32
    return %arg0, %c0_i32, %c0_i32_0 : i32, i32, i32
  }
  func.func @transform_2(%arg0: i32) -> (i32, i32, i32) {
    %c0_i32 = arith.constant 0 : i32
    %c0_i32_0 = arith.constant 0 : i32
    %c0_i32_1 = arith.constant 0 : i32
    return %arg0, %c0_i32, %c0_i32_0 : i32, i32, i32
  }
  func.func @transform_3(%arg0: i32) -> (i32, i32) {
    %c0_i32 = arith.constant 0 : i32
    %c0_i32_0 = arith.constant 0 : i32
    %c0_i32_1 = arith.constant 0 : i32
    return %c0_i32, %c0_i32_0 : i32, i32
  }
  func.func @transform_4(%arg0: i32) -> (i32, i32, i32) {
    %c0_i32 = arith.constant 0 : i32
    %c0_i32_0 = arith.constant 0 : i32
    %c0_i32_1 = arith.constant 0 : i32
    %c0_i32_2 = arith.constant 0 : i32
    return %c0_i32, %c0_i32_0, %c0_i32_1 : i32, i32, i32
  }
  func.func @transform_5(%arg0: i32) -> (i32, i32, i32) {
    %c0_i32 = arith.constant 0 : i32
    %c0_i32_0 = arith.constant 0 : i32
    %c0_i32_1 = arith.constant 0 : i32
    %c0_i32_2 = arith.constant 0 : i32
    return %c0_i32, %c0_i32_0, %c0_i32_1 : i32, i32, i32
  }
  func.func @transform_6(%arg0: i32) -> (i32, i32, i32) {
    %c0_i32 = arith.constant 0 : i32
    %c0_i32_0 = arith.constant 0 : i32
    %c0_i32_1 = arith.constant 0 : i32
    %c0_i32_2 = arith.constant 0 : i32
    return %c0_i32, %c0_i32_0, %c0_i32_1 : i32, i32, i32
  }
  func.func @transform_7(%arg0: i32) -> (i32, i32) {
    %c0_i32 = arith.constant 0 : i32
    %c0_i32_0 = arith.constant 0 : i32
    %c0_i32_1 = arith.constant 0 : i32
    return %c0_i32, %c0_i32_0 : i32, i32
  }
  func.func @transform_8(%arg0: i32) -> (i32, i32) {
    %c0_i32 = arith.constant 0 : i32
    %c0_i32_0 = arith.constant 0 : i32
    %c0_i32_1 = arith.constant 0 : i32
    return %c0_i32, %c0_i32_0 : i32, i32
  }
  func.func @transform_9(%arg0: i32) -> (i32, i32) {
    %c0_i32 = arith.constant 0 : i32
    %c0_i32_0 = arith.constant 0 : i32
    %c0_i32_1 = arith.constant 0 : i32
    return %c0_i32, %c0_i32_0 : i32, i32
  }
  func.func @transform_10(%arg0: i32) -> (i32, i32) {
    %c0_i32 = arith.constant 0 : i32
    %c0_i32_0 = arith.constant 0 : i32
    %c0_i32_1 = arith.constant 0 : i32
    return %c0_i32, %c0_i32_0 : i32, i32
  }
  func.func @transform_11(%arg0: i32) -> (i32, i32, i32) {
    %c0_i32 = arith.constant 0 : i32
    %c0_i32_0 = arith.constant 0 : i32
    %c0_i32_1 = arith.constant 0 : i32
    return %arg0, %c0_i32, %c0_i32_0 : i32, i32, i32
  }
  func.func @transform_12(%arg0: i32) -> (i32, i32, i32, i32) {
    %c0_i32 = arith.constant 0 : i32
    %c0_i32_0 = arith.constant 0 : i32
    %c0_i32_1 = arith.constant 0 : i32
    %c0_i32_2 = arith.constant 0 : i32
    return %arg0, %c0_i32, %c0_i32_0, %c0_i32_1 : i32, i32, i32, i32
  }
}

</mosaic_0001>

<bundles_post_ra>
// kernel: tpu_custom_call.1
= control target key start
LH: loop header
LB: loop body
LE: loop exit
PB: predicated region body
PF: predicated region fallthrough
CT: control target
= control target key end

     0   :  { %18 = vsyncpa [#allocation3], 0  ;;  %s4834_s0 = inlined_call_operand.hbm [shape: s32[2,8,1], index: 0, kind: input, shape index: {}]   ;;  %s4835_s1 = inlined_call_operand.hbm [shape: f32[2,8,1], index: 1, kind: input, shape index: {}]   ;;  %s4836_s2 = inlined_call_operand.hbm [shape: f32[2,8,1], index: 2, kind: input, shape index: {}]   ;;  %s4837_s3 = inlined_call_operand.hbm [shape: bf16[128,384], index: 3, kind: input, shape index: {}]   ;;  %s4838_s4 = inlined_call_operand.hbm [shape: f32[2,1,384], index: 4, kind: input, shape index: {}]   ;;  %s4839_s5 = inlined_call_operand.hbm [shape: bf16[2,384,384], index: 5, kind: input, shape index: {}]   ;;  %s4840_s6 = inlined_call_operand.hbm [shape: f32[2,1,384], index: 6, kind: input, shape index: {}]   ;;  %s4841_s7 = inlined_call_operand.hbm [shape: bf16[384,384], index: 7, kind: input, shape index: {}]   ;;  %s4842_s8 = inlined_call_operand.hbm [shape: f32[1,384], index: 8, kind: input, shape index: {}]   ;;  %s4843_s9 = inlined_call_operand.hbm [shape: f32[384,128], index: 9, kind: input, shape index: {}]   ;;  %s4844_s10 = inlined_call_operand.hbm [shape: f32[1,128], index: 10, kind: input, shape index: {}]   ;;  %s4845_s11 = inlined_call_operand.hbm [shape: f32[1,2,128], index: 11, kind: output, shape index: {0}]   ;;  %s4846_s12 = inlined_call_operand.hbm [shape: f32[1,2,2,128], index: 12, kind: output, shape index: {1}]  }
   0x1   :  { %19 = vsyncpa [#allocation6], 0 }
   0x2   :  { %20 = vsyncpa [#allocation9], 0 }
   0x3   :  { %21 = vsyncpa [#allocation12], 0 }
   0x4   :  { %22 = vsyncpa [#allocation15], 0 }
   0x5   :  { %23 = vsyncpa [#allocation18], 0 }
   0x6   :  { %24 = vsyncpa [#allocation4], 0 }
   0x7   :  { %25 = vsyncpa [#allocation22], 0  ;;  %s4346_s21 = smov [#allocation5]   ;;  %s4347_s23 = smov [#allocation8]  }
   0x8   :  { %s43_s22 = sshll.u32 %s4346_s21, 4  ;;  %s67_s24 = sshll.u32 %s4347_s23, 4  ;;  %s44_s22 = int_to_ptr.vmem [resolvable:$true] %s43_s22  ;;  %s4437_s24 = int_to_ptr.vmem [resolvable:$true] %s67_s24 }
   0x9   :  { %s4044_s27 = scalar_lea.hbm %s4835_s1, 256 }
   0xa   :  { %p4045_p0 = scmp.ne.s32.totalorder %s4835_s1, %s4044_s27  ;;  %p4048_p1 = scmp.lt.u32.totalorder %s4044_s27, %s4835_s1 }
   0xc   :  { %p4050_p2 = pnand %p4048_p1, %p4045_p0 }
   0xe   :  { %4053 = shalt.err (!%p4050_p2)
}
   0xf   :  { %s4054_s14 = scalar_lea.vmem %s44_s22, 256  ;;  %p4059_p4 = scmp.lt.s32.totalorder %s44_s22, %s44_s22 }
  0x10   :  { %p4055_p3 = scmp.ne.s32.totalorder %s44_s22, %s4054_s14  ;;  %p4060_p5 = scmp.lt.s32.totalorder %s4054_s14, %s4054_s14 }
  0x12   :  { %p4061_p6 = por %p4060_p5, %p4059_p4 }
  0x14   :  { %p4062_p7 = pnand %p4061_p6, %p4055_p3 }
  0x16   :  { %4065 = shalt.err (!%p4062_p7)
}
  0x17   :  { %s4348_s15 = smov 128   ;;  %s4349_s16 = smov 8  }
  0x18   :  { %49 = dma.hbm_to_vmem [thread:$0]  %s4835_s1, 256, %s44_s22, [#allocation6], %s4348_s15, %s4348_s15, %s4349_s16  }
  0x19   :  { %s4066_s21 = scalar_lea.hbm %s4837_s3, 3072 }
  0x1a   :  { %p4067_p8 = scmp.ne.s32.totalorder %s4837_s3, %s4066_s21  ;;  %p4070_p9 = scmp.lt.u32.totalorder %s4066_s21, %s4837_s3 }
  0x1c   :  { %p4072_p10 = pnand %p4070_p9, %p4067_p8 }
  0x1e   :  { %4075 = shalt.err (!%p4072_p10)
}
  0x1f   :  { %s4076_s28 = scalar_lea.vmem %s4437_s24, 3072  ;;  %p4081_p12 = scmp.lt.s32.totalorder %s4437_s24, %s4437_s24 }
  0x20   :  { %p4077_p11 = scmp.ne.s32.totalorder %s4437_s24, %s4076_s28  ;;  %p4082_p13 = scmp.lt.s32.totalorder %s4076_s28, %s4076_s28 }
  0x22   :  { %p4083_p0 = por %p4082_p13, %p4081_p12 }
  0x24   :  { %p4084_p1 = pnand %p4083_p0, %p4077_p11 }
  0x26   :  { %4087 = shalt.err (!%p4084_p1)
}
  0x27   :  { %s4350_s1 = smov 192   ;;  %s4351_s22 = smov 12  }
  0x28   :  { %73 = dma.hbm_to_vmem [thread:$0]  %s4837_s3, 3072, %s4437_s24, [#allocation9], %s4350_s1, %s4350_s1, %s4351_s22  }
  0x29   :  { %s4352_s13 = smov [#allocation11]   ;;  %s4353_s17 = smov [#allocation14]  }
  0x2a   :  { %s91_s14 = sshll.u32 %s4352_s13, 4  ;;  %s115_s18 = sshll.u32 %s4353_s17, 4  ;;  %s92_s14 = int_to_ptr.vmem [resolvable:$true] %s91_s14  ;;  %s4474_s18 = int_to_ptr.vmem [resolvable:$true] %s115_s18 }
  0x2b   :  { %s4088_s21 = scalar_lea.hbm %s4839_s5, 18432 }
  0x2c   :  { %p4089_p2 = scmp.ne.s32.totalorder %s4839_s5, %s4088_s21  ;;  %p4092_p3 = scmp.lt.u32.totalorder %s4088_s21, %s4839_s5 }
  0x2e   :  { %p4094_p4 = pnand %p4092_p3, %p4089_p2 }
  0x30   :  { %4097 = shalt.err (!%p4094_p4)
}
  0x31   :  { %s4098_s3 = scalar_lea.vmem %s92_s14, 18432  ;;  %p4103_p6 = scmp.lt.s32.totalorder %s92_s14, %s92_s14 }
  0x32   :  { %p4099_p5 = scmp.ne.s32.totalorder %s92_s14, %s4098_s3  ;;  %p4104_p7 = scmp.lt.s32.totalorder %s4098_s3, %s4098_s3 }
  0x34   :  { %p4105_p8 = por %p4104_p7, %p4103_p6 }
  0x36   :  { %p4106_p9 = pnand %p4105_p8, %p4099_p5 }
  0x38   :  { %4109 = shalt.err (!%p4106_p9)
}
  0x39   :  { %97 = dma.hbm_to_vmem [thread:$0]  %s4839_s5, 18432, %s92_s14, [#allocation12], %s4350_s1, %s4350_s1, %s4351_s22  }
  0x3a   :  { %s4110_s13 = scalar_lea.hbm %s4841_s7, 9216 }
  0x3b   :  { %p4111_p10 = scmp.ne.s32.totalorder %s4841_s7, %s4110_s13  ;;  %p4114_p11 = scmp.lt.u32.totalorder %s4110_s13, %s4841_s7 }
  0x3d   :  { %p4116_p12 = pnand %p4114_p11, %p4111_p10 }
  0x3f   :  { %4119 = shalt.err (!%p4116_p12)
}
  0x40   :  { %s4120_s23 = scalar_lea.vmem %s4474_s18, 9216  ;;  %p4125_p0 = scmp.lt.s32.totalorder %s4474_s18, %s4474_s18 }
  0x41   :  { %p4121_p13 = scmp.ne.s32.totalorder %s4474_s18, %s4120_s23  ;;  %p4126_p1 = scmp.lt.s32.totalorder %s4120_s23, %s4120_s23 }
  0x43   :  { %p4127_p2 = por %p4126_p1, %p4125_p0 }
  0x45   :  { %p4128_p3 = pnand %p4127_p2, %p4121_p13 }
  0x47   :  { %4131 = shalt.err (!%p4128_p3)
}
  0x48   :  { %121 = dma.hbm_to_vmem [thread:$0]  %s4841_s7, 9216, %s4474_s18, [#allocation15], %s4350_s1, %s4350_s1, %s4351_s22  }
  0x49   :  { %s4354_s25 = smov [#allocation17]   ;;  %s4355_s27 = smov [#allocation2]  }
  0x4a   :  { %s137_s26 = sshll.u32 %s4354_s25, 4  ;;  %s31_s3 = sshll.u32 %s4355_s27, 4  ;;  %s138_s26 = int_to_ptr.vmem [resolvable:$true] %s137_s26  ;;  %s4511_s3 = int_to_ptr.vmem [resolvable:$true] %s31_s3 }
  0x4b   :  { %s4132_s29 = scalar_lea.hbm %s4843_s9, 6144 }
  0x4c   :  { %p4133_p4 = scmp.ne.s32.totalorder %s4843_s9, %s4132_s29  ;;  %p4136_p5 = scmp.lt.u32.totalorder %s4132_s29, %s4843_s9 }
  0x4e   :  { %p4138_p6 = pnand %p4136_p5, %p4133_p4 }
  0x50   :  { %4141 = shalt.err (!%p4138_p6)
}
  0x51   :  { %s4142_s7 = scalar_lea.vmem %s138_s26, 6144  ;;  %p4147_p8 = scmp.lt.s32.totalorder %s138_s26, %s138_s26 }
  0x52   :  { %p4143_p7 = scmp.ne.s32.totalorder %s138_s26, %s4142_s7  ;;  %p4148_p9 = scmp.lt.s32.totalorder %s4142_s7, %s4142_s7 }
  0x54   :  { %p4149_p10 = por %p4148_p9, %p4147_p8 }
  0x56   :  { %p4150_p11 = pnand %p4149_p10, %p4143_p7 }
  0x58   :  { %4153 = shalt.err (!%p4150_p11)
}
  0x59   :  { %143 = dma.hbm_to_vmem [thread:$0]  %s4843_s9, 6144, %s138_s26, [#allocation18], %s4348_s15, %s4348_s15, %s4349_s16  }
  0x5a   :  { %s4154_s21 = scalar_lea.hbm %s4834_s0, 256 }
  0x5b   :  { %p4155_p12 = scmp.ne.s32.totalorder %s4834_s0, %s4154_s21  ;;  %p4158_p13 = scmp.lt.u32.totalorder %s4154_s21, %s4834_s0 }
  0x5d   :  { %p4160_p0 = pnand %p4158_p13, %p4155_p12 }
  0x5f   :  { %4163 = shalt.err (!%p4160_p0)
}
  0x60   :  { %s4164_s27 = scalar_lea.vmem %s4511_s3, 256  ;;  %p4169_p2 = scmp.lt.s32.totalorder %s4511_s3, %s4511_s3 }
  0x61   :  { %p4165_p1 = scmp.ne.s32.totalorder %s4511_s3, %s4164_s27  ;;  %p4170_p3 = scmp.lt.s32.totalorder %s4164_s27, %s4164_s27 }
  0x63   :  { %p4171_p4 = por %p4170_p3, %p4169_p2 }
  0x65   :  { %p4172_p5 = pnand %p4171_p4, %p4165_p1 }
  0x67   :  { %4175 = shalt.err (!%p4172_p5)
}
  0x68   :  { %37 = dma.hbm_to_vmem [thread:$0]  %s4834_s0, 256, %s4511_s3, [#allocation3], %s4348_s15, %s4348_s15, %s4349_s16  }
  0x69   :  { %s4356_s24 = smov [#allocation7]   ;;  %s4357_s29 = smov [#allocation10]  }
  0x6a   :  { %s55_s28 = sshll.u32 %s4356_s24, 4  ;;  %s79_s30 = sshll.u32 %s4357_s29, 4  ;;  %s56_s28 = int_to_ptr.vmem [resolvable:$true] %s55_s28  ;;  %s4548_s30 = int_to_ptr.vmem [resolvable:$true] %s79_s30 }
  0x6b   :  { %s4176_s19 = scalar_lea.hbm %s4836_s2, 256 }
  0x6c   :  { %p4177_p6 = scmp.ne.s32.totalorder %s4836_s2, %s4176_s19  ;;  %p4180_p7 = scmp.lt.u32.totalorder %s4176_s19, %s4836_s2 }
  0x6e   :  { %p4182_p8 = pnand %p4180_p7, %p4177_p6 }
  0x70   :  { %4185 = shalt.err (!%p4182_p8)
}
  0x71   :  { %s4186_s0 = scalar_lea.vmem %s56_s28, 256  ;;  %p4191_p10 = scmp.lt.s32.totalorder %s56_s28, %s56_s28 }
  0x72   :  { %p4187_p9 = scmp.ne.s32.totalorder %s56_s28, %s4186_s0  ;;  %p4192_p11 = scmp.lt.s32.totalorder %s4186_s0, %s4186_s0 }
  0x74   :  { %p4193_p12 = por %p4192_p11, %p4191_p10 }
  0x76   :  { %p4194_p13 = pnand %p4193_p12, %p4187_p9 }
  0x78   :  { %4197 = shalt.err (!%p4194_p13)
}
  0x79   :  { %61 = dma.hbm_to_vmem [thread:$0]  %s4836_s2, 256, %s56_s28, [#allocation6], %s4348_s15, %s4348_s15, %s4349_s16  }
  0x7a   :  { %s4198_s5 = scalar_lea.hbm %s4838_s4, 96 }
  0x7b   :  { %p4199_p0 = scmp.ne.s32.totalorder %s4838_s4, %s4198_s5  ;;  %p4202_p1 = scmp.lt.u32.totalorder %s4198_s5, %s4838_s4 }
  0x7d   :  { %p4204_p2 = pnand %p4202_p1, %p4199_p0 }
  0x7f   :  { %4207 = shalt.err (!%p4204_p2)
}
  0x80   :  { %s4208_s26 = scalar_lea.vmem %s4548_s30, 96  ;;  %p4213_p4 = scmp.lt.s32.totalorder %s4548_s30, %s4548_s30 }
  0x81   :  { %p4209_p3 = scmp.ne.s32.totalorder %s4548_s30, %s4208_s26  ;;  %p4214_p5 = scmp.lt.s32.totalorder %s4208_s26, %s4208_s26 }
  0x83   :  { %p4215_p6 = por %p4214_p5, %p4213_p4 }
  0x85   :  { %p4216_p7 = pnand %p4215_p6, %p4209_p3 }
  0x87   :  { %4219 = shalt.err (!%p4216_p7)
}
  0x88   :  { %s4358_s2 = smov 48   ;;  %s4359_s15 = smov 3  }
  0x89   :  { %85 = dma.hbm_to_vmem [thread:$0]  %s4838_s4, 96, %s4548_s30, [#allocation9], %s4358_s2, %s4358_s2, %s4359_s15  }
  0x8a   :  { %s4360_s28 = smov [#allocation13]   ;;  %s4361_s13 = smov [#allocation16]  }
  0x8b   :  { %s103_s29 = sshll.u32 %s4360_s28, 4  ;;  %s128_s17 = sshll.u32 %s4361_s13, 4  ;;  %s104_s29 = int_to_ptr.vmem [resolvable:$true] %s103_s29  ;;  %s129_s17 = int_to_ptr.vmem [resolvable:$true] %s128_s17 }
  0x8c   :  { %s4220_s1 = scalar_lea.hbm %s4840_s6, 96 }
  0x8d   :  { %p4221_p8 = scmp.ne.s32.totalorder %s4840_s6, %s4220_s1  ;;  %p4224_p9 = scmp.lt.u32.totalorder %s4220_s1, %s4840_s6 }
  0x8f   :  { %p4226_p10 = pnand %p4224_p9, %p4221_p8 }
  0x91   :  { %4229 = shalt.err (!%p4226_p10)
}
  0x92   :  { %s4230_s4 = scalar_lea.vmem %s104_s29, 96  ;;  %p4235_p12 = scmp.lt.s32.totalorder %s104_s29, %s104_s29 }
  0x93   :  { %p4231_p11 = scmp.ne.s32.totalorder %s104_s29, %s4230_s4  ;;  %p4236_p13 = scmp.lt.s32.totalorder %s4230_s4, %s4230_s4 }
  0x95   :  { %p4237_p0 = por %p4236_p13, %p4235_p12 }
  0x97   :  { %p4238_p1 = pnand %p4237_p0, %p4231_p11 }
  0x99   :  { %4241 = shalt.err (!%p4238_p1)
}
  0x9a   :  { %109 = dma.hbm_to_vmem [thread:$0]  %s4840_s6, 96, %s104_s29, [#allocation12], %s4358_s2, %s4358_s2, %s4359_s15  }
  0x9b   :  { %s4242_s5 = scalar_lea.hbm %s4842_s8, 48 }
  0x9c   :  { %p4243_p2 = scmp.ne.s32.totalorder %s4842_s8, %s4242_s5  ;;  %p4246_p3 = scmp.lt.u32.totalorder %s4242_s5, %s4842_s8 }
  0x9e   :  { %p4248_p4 = pnand %p4246_p3, %p4243_p2 }
  0xa0   :  { %4251 = shalt.err (!%p4248_p4)
}
  0xa1   :  { %s4252_s26 = scalar_lea.vmem %s129_s17, 48  ;;  %s4256_s16 = scalar_lea.vmem %s129_s17, 64 }
  0xa2   :  { %p4253_p5 = scmp.ne.s32.totalorder %s129_s17, %s4252_s26  ;;  %p4257_p6 = scmp.lt.s32.totalorder %s129_s17, %s129_s17 }
  0xa3   :  { %p4258_p7 = scmp.lt.s32.totalorder %s4256_s16, %s4252_s26 }
  0xa5   :  { %p4259_p8 = por %p4258_p7, %p4257_p6 }
  0xa7   :  { %p4260_p9 = pnand %p4259_p8, %p4253_p5 }
  0xa9   :  { %4263 = shalt.err (!%p4260_p9)
}
  0xaa   :  { %131 = dma.hbm_to_vmem [thread:$0]  %s4842_s8, 48, %s129_s17, [#allocation15]  }
  0xab   :  { %s4362_s15 = smov [#allocation19]   ;;  %s4264_s13 = scalar_lea.hbm %s4844_s10, 16 }
  0xac   :  { %s150_s24 = sshll.u32 %s4362_s15, 4  ;;  %p4265_p10 = scmp.ne.s32.totalorder %s4844_s10, %s4264_s13  ;;  %s151_s24 = int_to_ptr.vmem [resolvable:$true] %s150_s24 }
  0xad   :  { %p4268_p11 = scmp.lt.u32.totalorder %s4264_s13, %s4844_s10 }
  0xaf   :  { %p4270_p12 = pnand %p4268_p11, %p4265_p10 }
  0xb1   :  { %4273 = shalt.err (!%p4270_p12)
}
  0xb2   :  { %s4274_s18 = scalar_lea.vmem %s151_s24, 16  ;;  %s4278_s8 = scalar_lea.vmem %s151_s24, 32 }
  0xb3   :  { %p4275_p13 = scmp.ne.s32.totalorder %s151_s24, %s4274_s18  ;;  %p4279_p0 = scmp.lt.s32.totalorder %s151_s24, %s151_s24 }
  0xb4   :  { %p4280_p1 = scmp.lt.s32.totalorder %s4278_s8, %s4274_s18 }
  0xb6   :  { %p4281_p2 = por %p4280_p1, %p4279_p0 }
  0xb8   :  { %p4282_p3 = pnand %p4281_p2, %p4275_p13 }
  0xba   :  { %4285 = shalt.err (!%p4282_p3)
}
  0xbb   :  { %153 = dma.hbm_to_vmem [thread:$0]  %s4844_s10, 16, %s151_s24, [#allocation18]  }
  0xbc   :  { %4330 = dma.done.wait [#allocation3], 256  }
  0xbd   :  { %4331 = vsyncadd [#allocation3], 4294967040 }
  0xbe   :  { %4332 = dma.done.wait [#allocation6], 512  }
  0xbf   :  { %4333 = vsyncadd [#allocation6], 4294966784 }
  0xc0   :  { %4334 = dma.done.wait [#allocation9], 3168  }
  0xc1   :  { %4335 = vsyncadd [#allocation9], 4294964128 }
  0xc2   :  { %4336 = dma.done.wait [#allocation12], 18528  }
  0xc3   :  { %4337 = vsyncadd [#allocation12], 4294948768 }
  0xc4   :  { %4338 = dma.done.wait [#allocation15], 9264  }
  0xc5   :  { %4339 = vsyncadd [#allocation15], 4294958032 }
  0xc6   :  { %4340 = dma.done.wait [#allocation18], 6160  }
  0xc7   :  { %4341 = vsyncadd [#allocation18], 4294961136  ;;  %v4363_v0 = vmov 0   ;;  %v4364_v1 = vmov 0.0   ;;  %v188_v2 = vld [vmem:[#allocation2] sm:$0xff]  ;;  %v189_v3 = vld [vmem:[#allocation2 + $0x8] sm:$0xff]  ;;  %v190_v28 = vlaneseq }
  0xc8   :  { %3668 = vset.pattern.permute.xlu0 %v4363_v0  ;;  %3449 = vmatprep.subr.bf16.mxu1 %v4364_v1  ;;  %v3670_v4 = vld [vmem:[#allocation8 + $0x4] ss:$12 sps:$4 sm:$0xff]   ;;  %v3672_v5 = vld [vmem:[#allocation8] ss:$12 sps:$4 sm:$0xff]   ;;  %v3673_v6 = vld [vmem:[#allocation8 + $0x8] ss:$12 sps:$4 sm:$0xff]  }
  0xc9   :  { %404 = vmatprep.mubr.bf16.mxu0 %v4363_v0  ;;  %3669 = vset.pattern.permute.xlu1 %v4363_v0  ;;  %v3674_v7 = vld [vmem:[#allocation8 + $0x1c] ss:$12 sps:$4 sm:$0xff]   ;;  %v3676_v8 = vld [vmem:[#allocation8 + $0x18] ss:$12 sps:$4 sm:$0xff]   ;;  %v3677_v9 = vld [vmem:[#allocation8 + $0x20] ss:$12 sps:$4 sm:$0xff]  }
  0xca   :  { %193 = vperm.xlu0 %3668, %v188_v2   ;;  %372 = vmatprep.subr.bf16.mxu0 %v3670_v4  ;;  %v3678_v10 = vld [vmem:[#allocation8 + $0x34] ss:$12 sps:$4 sm:$0xff]   ;;  %vm4365_vm0 = vmmov 0   ;;  %v3680_v11 = vld [vmem:[#allocation8 + $0x30] ss:$12 sps:$4 sm:$0xff]   ;;  %v4631_v30 = vand.u32 127, %v190_v28 }
  0xcb   :  { %373 = vmatpush1.bf16.msra.mxu0 %v3672_v5  ;;  %3450 = vmatpush3.bf16.msra.mxu1 %v3673_v6  ;;  %v3681_v12 = vld [vmem:[#allocation8 + $0x38] ss:$12 sps:$4 sm:$0xff]   ;;  %v3684_v14 = vld [vmem:[#allocation8 + $0x48] ss:$12 sps:$4 sm:$0xff]   ;;  %v3685_v15 = vld [vmem:[#allocation8 + $0x50] ss:$12 sps:$4 sm:$0xff]  }
  0xcc   :  { %374 = vmatprep.subr.bf16.mxu0 %v3674_v7  ;;  %3451 = vmatprep.subr.bf16.mxu1 %v4364_v1  ;;  %v3682_v13 = vld [vmem:[#allocation8 + $0x4c] ss:$12 sps:$4 sm:$0xff]   ;;  %v3686_v16 = vld [vmem:[#allocation8 + $0x64] ss:$12 sps:$4 sm:$0xff]   ;;  %v3689_v18 = vld [vmem:[#allocation8 + $0x68] ss:$12 sps:$4 sm:$0xff]  }
  0xcd   :  { %3465 = vmatprep.mubr.msk.bf16.mxu1 %vm4365_vm0, %v4364_v1  ;;  %v3688_v17 = vld [vmem:[#allocation8 + $0x60] ss:$12 sps:$4 sm:$0xff]   ;;  %v3690_v19 = vld [vmem:[#allocation8 + $0x7c] ss:$12 sps:$4 sm:$0xff]   ;;  %v3692_v20 = vld [vmem:[#allocation8 + $0x78] ss:$12 sps:$4 sm:$0xff]  }
  0xce   :  { %196 = vperm.xlu0 %3668, %v189_v3   ;;  %v3693_v21 = vld [vmem:[#allocation8 + $0x80] ss:$12 sps:$4 sm:$0xff]   ;;  %v3696_v23 = vld [vmem:[#allocation8 + $0x90] ss:$12 sps:$4 sm:$0xff]   ;;  %v3697_v24 = vld [vmem:[#allocation8 + $0x98] ss:$12 sps:$4 sm:$0xff]  }
  0xcf   :  { %375 = vmatpush1.bf16.msra.mxu0 %v3676_v8  ;;  %3452 = vmatpush3.bf16.msra.mxu1 %v3677_v9  ;;  %v3694_v22 = vld [vmem:[#allocation8 + $0x94] ss:$12 sps:$4 sm:$0xff]   ;;  %v3698_v25 = vld [vmem:[#allocation8 + $0xac] ss:$12 sps:$4 sm:$0xff]   ;;  %v3701_v27 = vld [vmem:[#allocation8 + $0xb0] ss:$12 sps:$4 sm:$0xff]  }
  0xd0   :  { %376 = vmatprep.subr.bf16.mxu0 %v3678_v10  ;;  %3453 = vmatprep.subr.bf16.mxu1 %v4364_v1  ;;  %v3700_v26 = vld [vmem:[#allocation8 + $0xa8] ss:$12 sps:$4 sm:$0xff]   ;;  %v4366_v32 = vmov 1.0|1.0   ;;  %v4635_v33 = vshrl.u32 %v190_v28, 7  ;;  %vm507_vm4 = vcmask 7168  }
  0xd1   :  { %v460_v36 = vld [vmem:[#allocation10] sm:$0x7]  ;;  %v3702_v59 = vld [vmem:[#allocation11] ss:$12 sps:$4 sm:$0xff]   ;;  %v3704_v60 = vld [vmem:[#allocation11 + $0x4] ss:$12 sps:$4 sm:$0xff]  }
  0xd2   :  { %v4638_v34 = vsub.s32 0, %v4635_v33  ;;  %v4641_v35 = vsub.s32 1, %v4635_v33  ;;  %v4644_v37 = vsub.s32 2, %v4635_v33  ;;  %v3707_v61 = vld [vmem:[#allocation11 + $0x1c] ss:$12 sps:$4 sm:$0xff]   ;;  %vm2008_vm5 = vcmp.eq.s32.totalorder %v4635_v33, %v4631_v30  ;;  %s4368_s10 = smov [#allocation21]  }
  0xd3   :  { %377 = vmatpush1.bf16.msra.mxu0 %v3680_v11  ;;  %3454 = vmatpush3.bf16.msra.mxu1 %v3681_v12  ;;  %v3705_v62 = vld [vmem:[#allocation11 + $0x18] ss:$12 sps:$4 sm:$0xff]   ;;  %v3710_v63 = vld [vmem:[#allocation11 + $0x34] ss:$12 sps:$4 sm:$0xff]   ;;  %v3708_v4 = vld [vmem:[#allocation11 + $0x30] ss:$12 sps:$4 sm:$0xff]  }
  0xd4   :  { %378 = vmatprep.subr.bf16.mxu0 %v3682_v13  ;;  %3455 = vmatprep.subr.bf16.mxu1 %v4364_v1  ;;  %v465_v38 = vrot.slane %v460_v36, %v4638_v34  ;;  %v469_v39 = vrot.slane %v460_v36, %v4641_v35  ;;  %v473_v42 = vrot.slane %v460_v36, %v4644_v37  ;;  %v3729_v2 = vld [vmem:[#allocation11 + $0xc8] ss:$12 sps:$4 sm:$0xff]   ;;  %v3734_v5 = vld [vmem:[#allocation11 + $0xe0] ss:$12 sps:$4 sm:$0xff]   ;;  %v3739_v8 = vld [vmem:[#allocation11 + $0xf8] ss:$12 sps:$4 sm:$0xff]  }
  0xd5   :  { %v3730_v3 = vld [vmem:[#allocation11 + $0x8] ss:$12 sps:$4 sm:$0xff]   ;;  %v3713_v6 = vld [vmem:[#allocation11 + $0x4c] ss:$12 sps:$4 sm:$0xff]   ;;  %v3716_v10 = vld [vmem:[#allocation11 + $0x64] ss:$12 sps:$4 sm:$0xff]  }
  0xd6   :  { %v3735_v7 = vld [vmem:[#allocation11 + $0x20] ss:$12 sps:$4 sm:$0xff]   ;;  %v3711_v9 = vld [vmem:[#allocation11 + $0x48] ss:$12 sps:$4 sm:$0xff]   ;;  %v3740_v11 = vld [vmem:[#allocation11 + $0x38] ss:$12 sps:$4 sm:$0xff]  }
  0xd7   :  { %379 = vmatpush1.bf16.msra.mxu0 %v3684_v14  ;;  %3456 = vmatpush3.bf16.msra.mxu1 %v3685_v15  ;;  %v3744_v12 = vld [vmem:[#allocation11 + $0x110] ss:$12 sps:$4 sm:$0xff]   ;;  %v3714_v13 = vld [vmem:[#allocation11 + $0x60] ss:$12 sps:$4 sm:$0xff]   ;;  %v3731_v28 = vld [vmem:[#allocation11 + $0xd8] ss:$12 sps:$4 sm:$0xff]  }
  0xd8   :  { %380 = vmatprep.subr.bf16.mxu0 %v3686_v16  ;;  %3457 = vmatprep.subr.bf16.mxu1 %v4364_v1  ;;  %v3719_v14 = vld [vmem:[#allocation11 + $0x7c] ss:$12 sps:$4 sm:$0xff]   ;;  %vm2037_vm6 = vcmask 1041409   ;;  %s3020_s3 = sshll.u32 %s4368_s10, 4  ;;  %s3021_s3 = int_to_ptr.vmem [resolvable:$true] %s3020_s3 }
  0xd9   :  { %v3745_v15 = vld [vmem:[#allocation11 + $0x50] ss:$12 sps:$4 sm:$0xff]   ;;  %v3749_v16 = vld [vmem:[#allocation11 + $0x128] ss:$12 sps:$4 sm:$0xff]   ;;  %s4286_s4 = scalar_lea.vmem %s3021_s3, 64  ;;  %p4291_p5 = scmp.lt.s32.totalorder %s3021_s3, %s3021_s3 }
  0xda   :  { %v3741_v36 = vld [vmem:[#allocation11 + $0x108] ss:$12 sps:$4 sm:$0xff]   ;;  %p4287_p4 = scmp.ne.s32.totalorder %s3021_s3, %s4286_s4  ;;  %p4292_p6 = scmp.lt.s32.totalorder %s4286_s4, %s4286_s4 }
  0xdb   :  { %381 = vmatpush1.bf16.msra.mxu0 %v3688_v17  ;;  %3458 = vmatpush3.bf16.msra.mxu1 %v3689_v18  ;;  %v3717_v17 = vld [vmem:[#allocation11 + $0x78] ss:$12 sps:$4 sm:$0xff]   ;;  %v3722_v18 = vld [vmem:[#allocation11 + $0x94] ss:$12 sps:$4 sm:$0xff]  }
  0xdc   :  { %382 = vmatprep.subr.bf16.mxu0 %v3690_v19  ;;  %3459 = vmatprep.subr.bf16.mxu1 %v4364_v1  ;;  %v3750_v19 = vld [vmem:[#allocation11 + $0x68] ss:$12 sps:$4 sm:$0xff]   ;;  %p4293_p7 = por %p4292_p6, %p4291_p5 }
  0xde   :  { %p4294_p8 = pnand %p4293_p7, %p4287_p4 }
  0xdf   :  { %383 = vmatpush1.bf16.msra.mxu0 %v3692_v20  ;;  %3460 = vmatpush3.bf16.msra.mxu1 %v3693_v21  ;;  %v3754_v20 = vld [vmem:[#allocation11 + $0x140] ss:$12 sps:$4 sm:$0xff]   ;;  %v3720_v21 = vld [vmem:[#allocation11 + $0x90] ss:$12 sps:$4 sm:$0xff]  }
  0xe0   :  { %384 = vmatprep.subr.bf16.mxu0 %v3694_v22  ;;  %3461 = vmatprep.subr.bf16.mxu1 %v4364_v1  ;;  %v3725_v22 = vld [vmem:[#allocation11 + $0xac] ss:$12 sps:$4 sm:$0xff]  }
  0xe3   :  { %385 = vmatpush1.bf16.msra.mxu0 %v3696_v23  ;;  %3462 = vmatpush3.bf16.msra.mxu1 %v3697_v24  ;;  %v3755_v23 = vld [vmem:[#allocation11 + $0x80] ss:$12 sps:$4 sm:$0xff]   ;;  %v3723_v24 = vld [vmem:[#allocation11 + $0xa8] ss:$12 sps:$4 sm:$0xff]  }
  0xe4   :  { %386 = vmatprep.subr.bf16.mxu0 %v3698_v25  ;;  %3463 = vmatprep.subr.bf16.mxu1 %v4364_v1  ;;  %v3728_v25 = vld [vmem:[#allocation11 + $0xc4] ss:$12 sps:$4 sm:$0xff]  }
  0xe7   :  { %387 = vmatpush1.bf16.msra.mxu0 %v3700_v26  ;;  %3464 = vmatpush3.bf16.msra.mxu1 %v3701_v27  ;;  %v3726_v26 = vld [vmem:[#allocation11 + $0xc0] ss:$12 sps:$4 sm:$0xff]   ;;  %v3733_v27 = vld [vmem:[#allocation11 + $0xdc] ss:$12 sps:$4 sm:$0xff]  }
  0xe8   :  { %1046 = vmatprep.subr.bf16.mxu0 %v3704_v60  ;;  %3304 = vmatprep.subr.bf16.mxu1 %v3729_v2  ;;  %v459_v60 = vld [vmem:[#allocation7 + $0x8] sm:$0xff] }
 0x149   :  { %v194_v29 = vpop.permute.xlu0 %193 }
 0x14a   :  { %vm198_vm1 = vcmp.eq.s32.totalorder %v4631_v30, %v194_v29  ;;  %v3738_v29 = vld [vmem:[#allocation11 + $0xf4] ss:$12 sps:$4 sm:$0xff]  }
 0x14d   :  { %v197_v31 = vpop.permute.xlu0 %196 }
 0x14e   :  { %vm199_vm2 = vcmp.eq.s32.totalorder %v4631_v30, %v197_v31  ;;  %v3736_v31 = vld [vmem:[#allocation11 + $0xf0] ss:$12 sps:$4 sm:$0xff]  }
 0x14f   :  { %vm3291_vm3 = vmpackc.low %vm199_vm2, %vm198_vm1 }
 0x150   :  { %3292 = vmatmul.mubr.msk.bf16.vlgmr.msra.gmra.mrb[0].mxu0 %vm3291_vm3, %v4366_v32  ;;  %3466 = vmatmul.mubr.msk.bf16.vlgmr.msra.gmra.mrb[0].mxu1 %vm3291_vm3, %v4366_v32  ;;  %v3743_v32 = vld [vmem:[#allocation11 + $0x10c] ss:$12 sps:$4 sm:$0xff]  }
 0x151   :  { %1047 = vmatpush1.bf16.msra.mxu0 %v3702_v59  ;;  %3305 = vmatpush3.bf16.msra.mxu1 %v3730_v3 }
 0x152   :  { %1048 = vmatprep.subr.bf16.mxu0 %v3707_v61  ;;  %3306 = vmatprep.subr.bf16.mxu1 %v3734_v5 }
 0x155   :  { %1049 = vmatpush1.bf16.msra.mxu0 %v3705_v62  ;;  %3307 = vmatpush3.bf16.msra.mxu1 %v3735_v7 }
 0x156   :  { %1050 = vmatprep.subr.bf16.mxu0 %v3710_v63  ;;  %3308 = vmatprep.subr.bf16.mxu1 %v3739_v8  ;;  %v4670_v63 = vld [vmem:[#allocation5 + $0x8] sm:$0xff] }
 0x159   :  { %1051 = vmatpush1.bf16.msra.mxu0 %v3708_v4  ;;  %3309 = vmatpush3.bf16.msra.mxu1 %v3740_v11 }
 0x15a   :  { %1052 = vmatprep.subr.bf16.mxu0 %v3713_v6  ;;  %3310 = vmatprep.subr.bf16.mxu1 %v3744_v12 }
 0x15d   :  { %1053 = vmatpush1.bf16.msra.mxu0 %v3711_v9  ;;  %3311 = vmatpush3.bf16.msra.mxu1 %v3745_v15 }
 0x15e   :  { %1054 = vmatprep.subr.bf16.mxu0 %v3716_v10  ;;  %3312 = vmatprep.subr.bf16.mxu1 %v3749_v16 }
 0x161   :  { %1055 = vmatpush1.bf16.msra.mxu0 %v3714_v13  ;;  %3313 = vmatpush3.bf16.msra.mxu1 %v3750_v19 }
 0x162   :  { %1056 = vmatprep.subr.bf16.mxu0 %v3719_v14  ;;  %3314 = vmatprep.subr.bf16.mxu1 %v3754_v20 }
 0x165   :  { %1057 = vmatpush1.bf16.msra.mxu0 %v3717_v17  ;;  %3315 = vmatpush3.bf16.msra.mxu1 %v3755_v23  ;;  %v3758_v23 = vld [vmem:[#allocation11 + $0x154] ss:$12 sps:$4 sm:$0xff]  }
 0x166   :  { %1058 = vmatprep.subr.bf16.mxu0 %v3722_v18 }
 0x169   :  { %1059 = vmatpush1.bf16.msra.mxu0 %v3720_v21 }
 0x16a   :  { %1060 = vmatprep.subr.bf16.mxu0 %v3725_v22 }
 0x16d   :  { %1061 = vmatpush1.bf16.msra.mxu0 %v3723_v24  ;;  %v3759_v24 = vld [vmem:[#allocation11 + $0x158] ss:$12 sps:$4 sm:$0xff]  }
 0x16e   :  { %1062 = vmatprep.subr.bf16.mxu0 %v3728_v25  ;;  %3316 = vmatprep.subr.bf16.mxu1 %v3759_v24 }
 0x171   :  { %1063 = vmatpush1.bf16.msra.mxu0 %v3726_v26  ;;  %v3756_v26 = vld [vmem:[#allocation11 + $0x150] ss:$12 sps:$4 sm:$0xff]  }
 0x172   :  { %1064 = vmatprep.subr.bf16.mxu0 %v3733_v27  ;;  %v3760_v27 = vld [vmem:[#allocation11 + $0x98] ss:$12 sps:$4 sm:$0xff]  }
 0x173   :  { %3317 = vmatpush3.bf16.msra.mxu1 %v3760_v27  ;;  %v645_v27 = vld [vmem:[#allocation13] sm:$0x7] }
 0x175   :  { %1065 = vmatpush1.bf16.msra.mxu0 %v3731_v28 }
 0x176   :  { %1066 = vmatprep.subr.bf16.mxu0 %v3738_v29 }
 0x179   :  { %1067 = vmatpush1.bf16.msra.mxu0 %v3736_v31  ;;  %v3763_v31 = vld [vmem:[#allocation11 + $0x16c] ss:$12 sps:$4 sm:$0xff]  }
 0x17a   :  { %1068 = vmatprep.subr.bf16.mxu0 %v3743_v32  ;;  %v3764_v32 = vld [vmem:[#allocation11 + $0x170] ss:$12 sps:$4 sm:$0xff]  }
 0x17b   :  { %3318 = vmatprep.subr.bf16.mxu1 %v3764_v32  ;;  %v654_v32 = vrot.slane %v645_v27, %v4641_v35 }
 0x17d   :  { %1069 = vmatpush1.bf16.msra.mxu0 %v3741_v36  ;;  %v3761_v36 = vld [vmem:[#allocation11 + $0x168] ss:$12 sps:$4 sm:$0xff]  }
 0x223   :  { %v4648_v40 = vpop.f32.mrb[0].mxu0  ;;  %v4650_v41 = vpop.f32.mrb[0].mxu1 }
 0x224   :  { %v477_v43 = vmul.f32 %v465_v38, %v4648_v40  ;;  %v4654_v44 = vpop.f32.mrb[1].mxu0  ;;  %v3467_v45 = vpop.f32.mrb[1].mxu1  ;;  %v479_v53 = vmul.f32 %v473_v42, %v4650_v41 }
 0x225   :  { %v478_v46 = vmul.f32 %v469_v39, %v4654_v44  ;;  %v4657_v47 = vpop.f32.mrb[2].mxu0  ;;  %v4659_v48 = vpop.f32.mrb[2].mxu1 }
 0x226   :  { %v480_v49 = vmul.f32 %v465_v38, %v4657_v47  ;;  %v4662_v50 = vpop.f32.mrb[3].mxu0  ;;  %v3468_v51 = vpop.f32.mrb[3].mxu1  ;;  %v482_v56 = vmul.f32 %v473_v42, %v4659_v48  ;;  %v3748_v38 = vld [vmem:[#allocation11 + $0x124] ss:$12 sps:$4 sm:$0xff]   ;;  %v3753_v42 = vld [vmem:[#allocation11 + $0x13c] ss:$12 sps:$4 sm:$0xff]  }
 0x227   :  { %v481_v52 = vmul.f32 %v469_v39, %v4662_v50  ;;  %v483_v54 = vadd.f32 %v478_v46, %v477_v43  ;;  %v3746_v39 = vld [vmem:[#allocation11 + $0x120] ss:$12 sps:$4 sm:$0xff]   ;;  %1070 = vmatprep.subr.bf16.mxu0 %v3748_v38  ;;  %v3751_v43 = vld [vmem:[#allocation11 + $0x138] ss:$12 sps:$4 sm:$0xff]   ;;  %v3765_v38 = vld [vmem:[#allocation11 + $0xb0] ss:$12 sps:$4 sm:$0xff]  }
 0x228   :  { %1071 = vmatpush1.bf16.msra.mxu0 %v3746_v39  ;;  %3319 = vmatpush3.bf16.msra.mxu1 %v3765_v38  ;;  %v3768_v39 = vld [vmem:[#allocation11 + $0x184] ss:$12 sps:$4 sm:$0xff]  }
 0x229   :  { %v484_v55 = vadd.f32 %v483_v54, %v479_v53  ;;  %v487_v57 = vadd.f32 %v481_v52, %v480_v49  ;;  %1072 = vmatprep.subr.bf16.mxu0 %v3753_v42  ;;  %3469 = vmatprep.subr.bf16.mxu1 %v4364_v1 }
 0x22b   :  { %485 = vadd.xlane.f32.xlu1 %v484_v55  ;;  %v488_v58 = vadd.f32 %v487_v57, %v482_v56  ;;  %v458_v56 = vld [vmem:[#allocation7] sm:$0xff] }
 0x22c   :  { %1073 = vmatpush1.bf16.msra.mxu0 %v3751_v43 }
 0x22d   :  { %1074 = vmatprep.subr.bf16.mxu0 %v3758_v23 }
 0x22f   :  { %489 = vadd.xlane.f32.xlu1 %v488_v58  ;;  %v4667_v58 = vld [vmem:[#allocation5] sm:$0xff] }
 0x230   :  { %1075 = vmatpush1.bf16.msra.mxu0 %v3756_v26 }
 0x231   :  { %1076 = vmatprep.subr.bf16.mxu0 %v3763_v31  ;;  %v650_v31 = vrot.slane %v645_v27, %v4638_v34 }
 0x234   :  { %1077 = vmatpush1.bf16.msra.mxu0 %v3761_v36 }
 0x235   :  { %1089 = vmatprep.subr.bf16.mxu0 %v3768_v39 }
 0x2b8   :  { %v486_v45 = vpop.xlane.xlu1 %485 }
 0x2b9   :  { %v3068_v46 = vmul.f32 -1.442695, %v486_v45 }
 0x2bb   :  { %3990 = vpow2.f32 %v3068_v46 }
 0x2bc   :  { %v490_v49 = vpop.xlane.xlu1 %489 }
 0x2bd   :  { %v3069_v51 = vmul.f32 -1.442695, %v490_v49 }
 0x2bf   :  { %3992 = vpow2.f32 %v3069_v51 }
 0x2c5   :  { %v3991_v52 = vpop.eup %3990 }
 0x2c6   :  { %v497_v53 = vadd.f32 1.0, %v3991_v52 }
 0x2c8   :  { %3994 = vrcp.f32 %v497_v53 }
 0x2c9   :  { %v3993_v54 = vpop.eup %3992 }
 0x2ca   :  { %v498_v55 = vadd.f32 1.0, %v3993_v54 }
 0x2cc   :  { %3996 = vrcp.f32 %v498_v55 }
 0x2d2   :  { %v3995_v57 = vpop.eup %3994 }
 0x2d3   :  { %v503_v59 = vmul.f32 %v3995_v57, %v458_v56  ;;  %v3766_v57 = vld [vmem:[#allocation11 + $0x180] ss:$12 sps:$4 sm:$0xff]  }
 0x2d5   :  { %v505_v61 = vmul.f32 %v503_v59, %v4667_v58  ;;  %v3769_v59 = vld [vmem:[#allocation11 + $0x188] ss:$12 sps:$4 sm:$0xff]  }
 0x2d6   :  { %v3997_v62 = vpop.eup %3996 }
 0x2d7   :  { %v508_v2 = vsel %vm507_vm4, %v505_v61, 0.0  ;;  %v504_v3 = vmul.f32 %v3997_v62, %v459_v60  ;;  %v3772_v60 = vld [vmem:[#allocation11 + $0x19c] ss:$12 sps:$4 sm:$0xff]   ;;  %v3773_v62 = vld [vmem:[#allocation11 + $0x1a0] ss:$12 sps:$4 sm:$0xff]  }
 0x2d8   :  { %v509_v4 = vrot.slane %v508_v2, 4 }
 0x2d9   :  { %v506_v5 = vmul.f32 %v504_v3, %v4670_v63  ;;  %v3774_v3 = vld [vmem:[#allocation11 + $0x1b0] ss:$12 sps:$4 sm:$0xff]  }
 0x2da   :  { %v510_v6 = vadd.f32 %v509_v4, %v508_v2  ;;  %v3776_v2 = vld [vmem:[#allocation11 + $0x1b4] ss:$12 sps:$4 sm:$0xff]   ;;  %v3777_v4 = vld [vmem:[#allocation11 + $0x1b8] ss:$12 sps:$4 sm:$0xff]  }
 0x2db   :  { %v515_v7 = vsel %vm507_vm4, %v506_v5, 0.0 }
 0x2dc   :  { %v511_v8 = vrot.slane %v510_v6, 2  ;;  %v516_v9 = vrot.slane %v515_v7, 4 }
 0x2de   :  { %v512_v10 = vadd.f32 %v511_v8, %v510_v6  ;;  %v517_v11 = vadd.f32 %v516_v9, %v515_v7  ;;  %v3778_v6 = vld [vmem:[#allocation11 + $0x1c8] ss:$12 sps:$4 sm:$0xff]   ;;  %v3781_v7 = vld [vmem:[#allocation11 + $0x1d0] ss:$12 sps:$4 sm:$0xff]   ;;  %v3782_v9 = vld [vmem:[#allocation11 + $0x1e0] ss:$12 sps:$4 sm:$0xff]  }
 0x2df   :  { %v3784_v8 = vld [vmem:[#allocation11 + $0x1e4] ss:$12 sps:$4 sm:$0xff]  }
 0x2e0   :  { %v513_v12 = vrot.slane %v512_v10, 1  ;;  %v518_v13 = vrot.slane %v517_v11, 2 }
 0x2e2   :  { %v514_v14 = vadd.f32 %v513_v12, %v512_v10  ;;  %v519_v15 = vadd.f32 %v518_v13, %v517_v11  ;;  %v3785_v10 = vld [vmem:[#allocation11 + $0x1e8] ss:$12 sps:$4 sm:$0xff]   ;;  %v3786_v12 = vld [vmem:[#allocation11 + $0x1f8] ss:$12 sps:$4 sm:$0xff]   ;;  %v3789_v13 = vld [vmem:[#allocation11 + $0x200] ss:$12 sps:$4 sm:$0xff]  }
 0x2e3   :  { %v3788_v11 = vld [vmem:[#allocation11 + $0x1fc] ss:$12 sps:$4 sm:$0xff]  }
 0x2e4   :  { %v522_v16 = vadd.f32 1e-09, %v514_v14  ;;  %v520_v17 = vrot.slane %v519_v15, 1  ;;  %v3792_v14 = vld [vmem:[#allocation11 + $0x214] ss:$12 sps:$4 sm:$0xff]  }
 0x2e6   :  { %3998 = vrcp.f32 %v522_v16  ;;  %v521_v18 = vadd.f32 %v520_v17, %v519_v15  ;;  %v3790_v15 = vld [vmem:[#allocation11 + $0x210] ss:$12 sps:$4 sm:$0xff]   ;;  %v3793_v16 = vld [vmem:[#allocation11 + $0x218] ss:$12 sps:$4 sm:$0xff]  }
 0x2e7   :  { %v3796_v17 = vld [vmem:[#allocation11 + $0x22c] ss:$12 sps:$4 sm:$0xff]  }
 0x2e8   :  { %v523_v19 = vadd.f32 1e-09, %v521_v18  ;;  %v3794_v18 = vld [vmem:[#allocation11 + $0x228] ss:$12 sps:$4 sm:$0xff]  }
 0x2ea   :  { %4000 = vrcp.f32 %v523_v19  ;;  %v3797_v19 = vld [vmem:[#allocation11 + $0x230] ss:$12 sps:$4 sm:$0xff]  }
 0x2f0   :  { %v3999_v20 = vpop.eup %3998 }
 0x2f1   :  { %v4675_v21 = vmul.f32 %v3999_v20, %v505_v61  ;;  %v3770_v61 = vld [vmem:[#allocation11 + $0x198] ss:$12 sps:$4 sm:$0xff]  }
 0x2f3   :  { %v528_v22 = vmul.f32 8.0, %v4675_v21 }
 0x2f4   :  { %v4001_v25 = vpop.eup %4000 }
 0x2f5   :  { %532 = vperm.xlu0 %3668, %v528_v22   ;;  %v4678_v28 = vmul.f32 %v4001_v25, %v506_v5  ;;  %v3780_v5 = vld [vmem:[#allocation11 + $0x1cc] ss:$12 sps:$4 sm:$0xff]  }
 0x2f7   :  { %v529_v29 = vmul.f32 8.0, %v4678_v28 }
 0x2f9   :  { %537 = vperm.xlu1 %3669, %v529_v29   ;;  %v658_v29 = vrot.slane %v645_v27, %v4644_v37  ;;  %v3804_v27 = vld [vmem:[#allocation11 + $0x270] ss:$12 sps:$4 sm:$0xff]  }
 0x374   :  { %v533_v42 = vpop.permute.xlu0 %532 }
 0x375   :  { %v540_v43 = vmul.f32 %v533_v42, %v4648_v40  ;;  %v541_v45 = vmul.f32 %v533_v42, %v4654_v44  ;;  %v542_v49 = vmul.f32 %v533_v42, %v4650_v41 }
 0x378   :  { %v538_v46 = vpop.permute.xlu1 %537 }
 0x379   :  { %v543_v51 = vmul.f32 %v538_v46, %v4657_v47  ;;  %v544_v52 = vmul.f32 %v538_v46, %v4662_v50  ;;  %v545_v53 = vmul.f32 %v538_v46, %v4659_v48 }
 0x37b   :  { %v546_v54 = vpack.c.bf16 %v543_v51, %v540_v43  ;;  %v548_v55 = vpack.c.bf16 %v545_v53, %v542_v49  ;;  %v547_v56 = vpack.c.bf16 %v544_v52, %v541_v45 }
 0x37d   :  { %1078 = vmatprep.mubr.bf16.mxu0 %v547_v56  ;;  %1164 = vmatprep.mubr.bf16.mxu1 %v547_v56 }
 0x37e   :  { %1079 = vmatmul.mubr.bf16.vlgmr.msra.gmra.mrb[4].mxu0 %v546_v54  ;;  %1165 = vmatmul.mubr.bf16.vlgmr.msra.gmra.mrb[4].mxu1 %v546_v54 }
 0x37f   :  { %1090 = vmatpush1.bf16.msra.mxu0 %v3766_v57  ;;  %3470 = vmatpush3.bf16.msra.mxu1 %v3769_v59 }
 0x380   :  { %1091 = vmatprep.subr.bf16.mxu0 %v3772_v60  ;;  %3471 = vmatprep.subr.bf16.mxu1 %v4364_v1  ;;  %v1233_v60 = vld [vmem:[#allocation10 + $0x3] sm:$0x7] }
 0x381   :  { %1121 = vmatprep.mubr.bf16.mxu0 %v4363_v0  ;;  %3485 = vmatprep.mubr.msk.bf16.mxu1 %vm4365_vm0, %v4364_v1 }
 0x383   :  { %1092 = vmatpush1.bf16.msra.mxu0 %v3770_v61  ;;  %3472 = vmatpush3.bf16.msra.mxu1 %v3773_v62  ;;  %v1238_v61 = vrot.slane %v1233_v60, %v4638_v34 }
 0x384   :  { %1093 = vmatprep.subr.bf16.mxu0 %v3776_v2  ;;  %3473 = vmatprep.subr.bf16.mxu1 %v4364_v1 }
 0x387   :  { %1094 = vmatpush1.bf16.msra.mxu0 %v3774_v3  ;;  %3474 = vmatpush3.bf16.msra.mxu1 %v3777_v4  ;;  %v1242_v4 = vrot.slane %v1233_v60, %v4641_v35 }
 0x388   :  { %1095 = vmatprep.subr.bf16.mxu0 %v3780_v5  ;;  %3475 = vmatprep.subr.bf16.mxu1 %v4364_v1 }
 0x38b   :  { %1096 = vmatpush1.bf16.msra.mxu0 %v3778_v6  ;;  %3476 = vmatpush3.bf16.msra.mxu1 %v3781_v7 }
 0x38c   :  { %1097 = vmatprep.subr.bf16.mxu0 %v3784_v8  ;;  %3477 = vmatprep.subr.bf16.mxu1 %v4364_v1 }
 0x38f   :  { %1098 = vmatpush1.bf16.msra.mxu0 %v3782_v9  ;;  %3478 = vmatpush3.bf16.msra.mxu1 %v3785_v10  ;;  %v1246_v9 = vrot.slane %v1233_v60, %v4644_v37  ;;  %v3855_v60 = vld [vmem:[#allocation11 + $0x398] ss:$12 sps:$4 sm:$0xff]  }
 0x390   :  { %1099 = vmatprep.subr.bf16.mxu0 %v3788_v11  ;;  %3479 = vmatprep.subr.bf16.mxu1 %v4364_v1 }
 0x393   :  { %1100 = vmatpush1.bf16.msra.mxu0 %v3786_v12  ;;  %3480 = vmatpush3.bf16.msra.mxu1 %v3789_v13 }
 0x394   :  { %1101 = vmatprep.subr.bf16.mxu0 %v3792_v14  ;;  %3481 = vmatprep.subr.bf16.mxu1 %v4364_v1 }
 0x397   :  { %1102 = vmatpush1.bf16.msra.mxu0 %v3790_v15  ;;  %3482 = vmatpush3.bf16.msra.mxu1 %v3793_v16 }
 0x398   :  { %1103 = vmatprep.subr.bf16.mxu0 %v3796_v17  ;;  %3483 = vmatprep.subr.bf16.mxu1 %v4364_v1 }
 0x39b   :  { %1104 = vmatpush1.bf16.msra.mxu0 %v3794_v18  ;;  %3484 = vmatpush3.bf16.msra.mxu1 %v3797_v19 }
 0x39e   :  { %1122 = vmatmul.mubr.bf16.vlgmr.msra.gmra.mrb[4].mxu0 %v548_v55  ;;  %3486 = vmatmul.mubr.bf16.vlgmr.msra.gmra.mrb[8].mxu1 %v548_v55 }
 0x451   :  { %v3320_v20 = vpop.f32.mrb[4].mxu1 }
 0x452   :  { %v3321_v22 = vpop.f32.mrb[5].mxu1 }
 0x453   :  { %v3322_v23 = vadd.f32 %v3321_v22, %v3320_v20  ;;  %v3323_v24 = vpop.f32.mrb[6].mxu1  ;;  %v3798_v22 = vld [vmem:[#allocation11 + $0x240] ss:$12 sps:$4 sm:$0xff]  }
 0x454   :  { %v3324_v25 = vpop.f32.mrb[7].mxu1 }
 0x455   :  { %v3325_v26 = vadd.f32 %v3324_v25, %v3323_v24  ;;  %v1167_v36 = vadd.f32 %v3322_v23, %v658_v29  ;;  %v3803_v23 = vld [vmem:[#allocation11 + $0x25c] ss:$12 sps:$4 sm:$0xff]   ;;  %v3806_v24 = vld [vmem:[#allocation11 + $0x274] ss:$12 sps:$4 sm:$0xff]  }
 0x456   :  { %v3825_v25 = vld [vmem:[#allocation11 + $0x308] ss:$12 sps:$4 sm:$0xff]  }
 0x457   :  { %v1170_v49 = vadd.f32 %v3325_v26, %v658_v29  ;;  %v3826_v26 = vld [vmem:[#allocation11 + $0x248] ss:$12 sps:$4 sm:$0xff]   ;;  %v3830_v29 = vld [vmem:[#allocation11 + $0x320] ss:$12 sps:$4 sm:$0xff]   ;;  %3335 = vmatprep.subr.bf16.mxu0 %v3825_v25 }
 0x458   :  { %3336 = vmatpush3.bf16.msra.mxu0 %v3826_v26 }
 0x459   :  { %3337 = vmatprep.subr.bf16.mxu0 %v3830_v29 }
 0x471   :  { %v1123_v38 = vpop.f32.mrb[4].mxu0  ;;  %v1207_v39 = vpop.f32.mrb[8].mxu1 }
 0x472   :  { %v3620_v42 = vadd.f32 %v1123_v38, %v650_v31  ;;  %v1208_v43 = vadd.f32 %v1207_v39, %v1167_v36  ;;  %v1125_v45 = vpop.f32.mrb[5].mxu0  ;;  %v3487_v46 = vpop.f32.mrb[9].mxu1  ;;  %v3835_v36 = vld [vmem:[#allocation11 + $0x338] ss:$12 sps:$4 sm:$0xff]   ;;  %v3807_v38 = vld [vmem:[#allocation11 + $0x288] ss:$12 sps:$4 sm:$0xff]  }
 0x473   :  { %v3621_v51 = vadd.f32 %v1125_v45, %v654_v32  ;;  %v1127_v52 = vpop.f32.mrb[6].mxu0  ;;  %v1210_v53 = vpop.f32.mrb[10].mxu1  ;;  %v3812_v39 = vld [vmem:[#allocation11 + $0x2a4] ss:$12 sps:$4 sm:$0xff]   ;;  %v3810_v45 = vld [vmem:[#allocation11 + $0x2a0] ss:$12 sps:$4 sm:$0xff]  }
 0x474   :  { %4002 = vtanh.f32 %v3620_v42  ;;  %v3622_v54 = vadd.f32 %v1127_v52, %v650_v31  ;;  %v1211_v55 = vadd.f32 %v1210_v53, %v1170_v49  ;;  %v1129_v56 = vpop.f32.mrb[7].mxu0  ;;  %v3488_v57 = vpop.f32.mrb[11].mxu1  ;;  %v3809_v31 = vld [vmem:[#allocation11 + $0x28c] ss:$12 sps:$4 sm:$0xff]   ;;  %v3815_v46 = vld [vmem:[#allocation11 + $0x2bc] ss:$12 sps:$4 sm:$0xff]  }
 0x475   :  { %4004 = vtanh.f32 %v1208_v43  ;;  %v3623_v59 = vadd.f32 %v1129_v56, %v654_v32  ;;  %v3831_v32 = vld [vmem:[#allocation11 + $0x260] ss:$12 sps:$4 sm:$0xff]   ;;  %v3836_v42 = vld [vmem:[#allocation11 + $0x278] ss:$12 sps:$4 sm:$0xff]   ;;  %v3840_v43 = vld [vmem:[#allocation11 + $0x350] ss:$12 sps:$4 sm:$0xff]  }
 0x476   :  { %4006 = vtanh.f32 %v3621_v51  ;;  %3338 = vmatpush3.bf16.msra.mxu0 %v3831_v32  ;;  %v3841_v49 = vld [vmem:[#allocation11 + $0x290] ss:$12 sps:$4 sm:$0xff]   ;;  %v3845_v51 = vld [vmem:[#allocation11 + $0x368] ss:$12 sps:$4 sm:$0xff]   ;;  %v3813_v52 = vld [vmem:[#allocation11 + $0x2b8] ss:$12 sps:$4 sm:$0xff]  }
 0x477   :  { %4008 = vtanh.f32 %v3622_v54  ;;  %3339 = vmatprep.subr.bf16.mxu0 %v3835_v36  ;;  %v3818_v53 = vld [vmem:[#allocation11 + $0x2d4] ss:$12 sps:$4 sm:$0xff]   ;;  %v3816_v56 = vld [vmem:[#allocation11 + $0x2d0] ss:$12 sps:$4 sm:$0xff]   ;;  %v3821_v57 = vld [vmem:[#allocation11 + $0x2ec] ss:$12 sps:$4 sm:$0xff]  }
 0x478   :  { %4010 = vtanh.f32 %v1211_v55  ;;  %v3846_v54 = vld [vmem:[#allocation11 + $0x2a8] ss:$12 sps:$4 sm:$0xff]   ;;  %v3850_v55 = vld [vmem:[#allocation11 + $0x380] ss:$12 sps:$4 sm:$0xff]  }
 0x479   :  { %4012 = vtanh.f32 %v3623_v59  ;;  %v3851_v59 = vld [vmem:[#allocation11 + $0x2c0] ss:$12 sps:$4 sm:$0xff]  }
 0x47a   :  { %3340 = vmatpush3.bf16.msra.mxu0 %v3836_v42 }
 0x47b   :  { %3341 = vmatprep.subr.bf16.mxu0 %v3840_v43 }
 0x47e   :  { %v4003_v62 = vpop.eup %4002  ;;  %3342 = vmatpush3.bf16.msra.mxu0 %v3841_v49 }
 0x47f   :  { %v4005_v2 = vpop.eup %4004  ;;  %v4703_v3 = vadd.f32 %v4003_v62, %v4648_v40  ;;  %3343 = vmatprep.subr.bf16.mxu0 %v3845_v51  ;;  %v3824_v62 = vld [vmem:[#allocation11 + $0x304] ss:$12 sps:$4 sm:$0xff]  }
 0x480   :  { %v4007_v5 = vpop.eup %4006  ;;  %v4707_v6 = vadd.f32 %v4005_v2, %v4650_v41  ;;  %v3856_v2 = vld [vmem:[#allocation11 + $0x2d8] ss:$12 sps:$4 sm:$0xff]  }
 0x481   :  { %v4009_v7 = vpop.eup %4008  ;;  %v4710_v8 = vadd.f32 %v4007_v5, %v4654_v44  ;;  %v1250_v10 = vmul.f32 %v1238_v61, %v4703_v3  ;;  %v3829_v5 = vld [vmem:[#allocation11 + $0x31c] ss:$12 sps:$4 sm:$0xff]  }
 0x482   :  { %v4011_v11 = vpop.eup %4010  ;;  %v4715_v12 = vadd.f32 %v4009_v7, %v4657_v47  ;;  %v1252_v15 = vmul.f32 %v1246_v9, %v4707_v6  ;;  %3344 = vmatpush3.bf16.msra.mxu0 %v3846_v54  ;;  %v3827_v7 = vld [vmem:[#allocation11 + $0x318] ss:$12 sps:$4 sm:$0xff]  }
 0x483   :  { %v4013_v40 = vpop.eup %4012  ;;  %v1251_v13 = vmul.f32 %v1242_v4, %v4710_v8  ;;  %v4719_v14 = vadd.f32 %v4011_v11, %v4659_v48  ;;  %v3800_v48 = vld [vmem:[#allocation11 + $0x244] ss:$12 sps:$4 sm:$0xff]   ;;  %3345 = vmatprep.subr.bf16.mxu0 %v3850_v55  ;;  %v3839_v11 = vld [vmem:[#allocation11 + $0x34c] ss:$12 sps:$4 sm:$0xff]  }
 0x484   :  { %v4722_v41 = vadd.f32 %v4013_v40, %v4662_v50  ;;  %v1253_v44 = vmul.f32 %v1238_v61, %v4715_v12  ;;  %1820 = vmatprep.subr.bf16.mxu1 %v3800_v48  ;;  %v3801_v50 = vld [vmem:[#allocation11 + $0x258] ss:$12 sps:$4 sm:$0xff]   ;;  %v3819_v61 = vld [vmem:[#allocation11 + $0x2e8] ss:$12 sps:$4 sm:$0xff]  }
 0x485   :  { %v1256_v16 = vadd.f32 %v1251_v13, %v1250_v10  ;;  %v1255_v47 = vmul.f32 %v1246_v9, %v4719_v14  ;;  %1821 = vmatpush1.bf16.msra.mxu1 %v3798_v22  ;;  %v3834_v9 = vld [vmem:[#allocation11 + $0x334] ss:$12 sps:$4 sm:$0xff]   ;;  %v3832_v10 = vld [vmem:[#allocation11 + $0x330] ss:$12 sps:$4 sm:$0xff]  }
 0x486   :  { %v1254_v17 = vmul.f32 %v1242_v4, %v4722_v41  ;;  %1822 = vmatprep.subr.bf16.mxu1 %v3803_v23  ;;  %3346 = vmatpush3.bf16.msra.mxu0 %v3851_v59  ;;  %v3822_v4 = vld [vmem:[#allocation11 + $0x300] ss:$12 sps:$4 sm:$0xff]   ;;  %v3837_v40 = vld [vmem:[#allocation11 + $0x348] ss:$12 sps:$4 sm:$0xff]   ;;  %v3844_v13 = vld [vmem:[#allocation11 + $0x364] ss:$12 sps:$4 sm:$0xff]  }
 0x487   :  { %v1257_v18 = vadd.f32 %v1256_v16, %v1252_v15  ;;  %3347 = vmatprep.subr.bf16.mxu0 %v3855_v60  ;;  %v3849_v15 = vld [vmem:[#allocation11 + $0x37c] ss:$12 sps:$4 sm:$0xff]  }
 0x488   :  { %v1260_v19 = vadd.f32 %v1254_v17, %v1253_v44  ;;  %v3842_v44 = vld [vmem:[#allocation11 + $0x360] ss:$12 sps:$4 sm:$0xff]   ;;  %v3847_v17 = vld [vmem:[#allocation11 + $0x378] ss:$12 sps:$4 sm:$0xff]   ;;  %v3852_v22 = vld [vmem:[#allocation11 + $0x390] ss:$12 sps:$4 sm:$0xff]  }
 0x489   :  { %1258 = vadd.xlane.f32.xlu0 %v1257_v18  ;;  %1823 = vmatpush1.bf16.msra.mxu1 %v3801_v50 }
 0x48a   :  { %v1261_v20 = vadd.f32 %v1260_v19, %v1255_v47  ;;  %1824 = vmatprep.subr.bf16.mxu1 %v3806_v24  ;;  %3348 = vmatpush3.bf16.msra.mxu0 %v3856_v2  ;;  %v3854_v47 = vld [vmem:[#allocation11 + $0x394] ss:$12 sps:$4 sm:$0xff]  }
 0x48c   :  { %1262 = vadd.xlane.f32.xlu1 %v1261_v20 }
 0x48d   :  { %1825 = vmatpush1.bf16.msra.mxu1 %v3804_v27 }
 0x48e   :  { %1826 = vmatprep.subr.bf16.mxu1 %v3809_v31 }
 0x491   :  { %1827 = vmatpush1.bf16.msra.mxu1 %v3807_v38 }
 0x492   :  { %1828 = vmatprep.subr.bf16.mxu1 %v3812_v39 }
 0x495   :  { %1829 = vmatpush1.bf16.msra.mxu1 %v3810_v45 }
 0x496   :  { %1830 = vmatprep.subr.bf16.mxu1 %v3815_v46 }
 0x499   :  { %1831 = vmatpush1.bf16.msra.mxu1 %v3813_v52 }
 0x49a   :  { %1832 = vmatprep.subr.bf16.mxu1 %v3818_v53 }
 0x49d   :  { %1833 = vmatpush1.bf16.msra.mxu1 %v3816_v56 }
 0x49e   :  { %1834 = vmatprep.subr.bf16.mxu1 %v3821_v57 }
 0x4a1   :  { %1835 = vmatpush1.bf16.msra.mxu1 %v3819_v61 }
 0x4a2   :  { %1836 = vmatprep.subr.bf16.mxu1 %v3824_v62 }
 0x4a5   :  { %1837 = vmatpush1.bf16.msra.mxu1 %v3822_v4  ;;  %v3859_v4 = vld [vmem:[#allocation11 + $0x3ac] ss:$12 sps:$4 sm:$0xff]  }
 0x4a6   :  { %1838 = vmatprep.subr.bf16.mxu1 %v3829_v5  ;;  %v3860_v5 = vld [vmem:[#allocation11 + $0x3b0] ss:$12 sps:$4 sm:$0xff]  }
 0x4a7   :  { %3349 = vmatprep.subr.bf16.mxu0 %v3860_v5 }
 0x4a9   :  { %1839 = vmatpush1.bf16.msra.mxu1 %v3827_v7  ;;  %v3857_v7 = vld [vmem:[#allocation11 + $0x3a8] ss:$12 sps:$4 sm:$0xff]  }
 0x4aa   :  { %1840 = vmatprep.subr.bf16.mxu1 %v3834_v9  ;;  %v3861_v9 = vld [vmem:[#allocation11 + $0x2f0] ss:$12 sps:$4 sm:$0xff]  }
 0x4ab   :  { %3350 = vmatpush3.bf16.msra.mxu0 %v3861_v9 }
 0x4ac   :  { %3489 = vmatprep.subr.bf16.mxu0 %v4364_v1 }
 0x4ad   :  { %1841 = vmatpush1.bf16.msra.mxu1 %v3832_v10  ;;  %v3864_v10 = vld [vmem:[#allocation11 + $0x3c4] ss:$12 sps:$4 sm:$0xff]  }
 0x4ae   :  { %1842 = vmatprep.subr.bf16.mxu1 %v3839_v11 }
 0x4b1   :  { %1843 = vmatpush1.bf16.msra.mxu1 %v3837_v40  ;;  %v3216_v40 = vsel %vm2008_vm5, 1.0, %v4364_v1 }
 0x4b2   :  { %1844 = vmatprep.subr.bf16.mxu1 %v3844_v13 }
 0x4b5   :  { %1845 = vmatpush1.bf16.msra.mxu1 %v3842_v44 }
 0x4b6   :  { %1846 = vmatprep.subr.bf16.mxu1 %v3849_v15 }
 0x4b9   :  { %1847 = vmatpush1.bf16.msra.mxu1 %v3847_v17 }
 0x4ba   :  { %1848 = vmatprep.subr.bf16.mxu1 %v3854_v47  ;;  %v3865_v47 = vld [vmem:[#allocation11 + $0x3c8] ss:$12 sps:$4 sm:$0xff]  }
 0x4bd   :  { %1849 = vmatpush1.bf16.msra.mxu1 %v3852_v22 }
 0x4be   :  { %1850 = vmatprep.subr.bf16.mxu1 %v3859_v4  ;;  %v3881_v4 = vld [vmem:[#allocation11 + $0x428] ss:$12 sps:$4 sm:$0xff]  }
 0x4c1   :  { %1851 = vmatpush1.bf16.msra.mxu1 %v3857_v7  ;;  %v3884_v7 = vld [vmem:[#allocation11 + $0x43c] ss:$12 sps:$4 sm:$0xff]  }
 0x4c2   :  { %1863 = vmatprep.subr.bf16.mxu1 %v3864_v10 }
 0x516   :  { %v1259_v16 = vpop.xlane.xlu0 %1258 }
 0x517   :  { %v3142_v18 = vmul.f32 -1.442695, %v1259_v16 }
 0x519   :  { %4014 = vpow2.f32 %v3142_v18  ;;  %v1263_v19 = vpop.xlane.xlu1 %1262  ;;  %v3862_v18 = vld [vmem:[#allocation11 + $0x3c0] ss:$12 sps:$4 sm:$0xff]  }
 0x51a   :  { %v3143_v20 = vmul.f32 -1.442695, %v1263_v19 }
 0x51c   :  { %4016 = vpow2.f32 %v3143_v20  ;;  %v3868_v20 = vld [vmem:[#allocation11 + $0x3dc] ss:$12 sps:$4 sm:$0xff]  }
 0x523   :  { %v4015_v48 = vpop.eup %4014 }
 0x524   :  { %v1270_v23 = vadd.f32 1.0, %v4015_v48 }
 0x526   :  { %v4017_v50 = vpop.eup %4016  ;;  %4018 = vrcp.f32 %v1270_v23 }
 0x527   :  { %v1271_v24 = vadd.f32 1.0, %v4017_v50  ;;  %v3866_v50 = vld [vmem:[#allocation11 + $0x3d8] ss:$12 sps:$4 sm:$0xff]  }
 0x529   :  { %4020 = vrcp.f32 %v1271_v24  ;;  %v3869_v24 = vld [vmem:[#allocation11 + $0x3e0] ss:$12 sps:$4 sm:$0xff]  }
 0x530   :  { %v4019_v25 = vpop.eup %4018 }
 0x531   :  { %v1276_v26 = vmul.f32 %v4019_v25, %v4675_v21 }
 0x533   :  { %v4021_v27 = vpop.eup %4020  ;;  %v1278_v29 = vmul.f32 %v1276_v26, %v4667_v58 }
 0x534   :  { %v1277_v31 = vmul.f32 %v4021_v27, %v4678_v28  ;;  %v3872_v27 = vld [vmem:[#allocation11 + $0x3f4] ss:$12 sps:$4 sm:$0xff]  }
 0x535   :  { %v1280_v32 = vsel %vm507_vm4, %v1278_v29, 0.0 }
 0x536   :  { %v1281_v36 = vrot.slane %v1280_v32, 4  ;;  %v1279_v38 = vmul.f32 %v1277_v31, %v4670_v63 }
 0x538   :  { %v1282_v39 = vadd.f32 %v1281_v36, %v1280_v32  ;;  %v1287_v42 = vsel %vm507_vm4, %v1279_v38, 0.0 }
 0x539   :  { %v1288_v43 = vrot.slane %v1287_v42, 4 }
 0x53a   :  { %v1283_v45 = vrot.slane %v1282_v39, 2 }
 0x53b   :  { %v1289_v46 = vadd.f32 %v1288_v43, %v1287_v42 }
 0x53c   :  { %v1284_v49 = vadd.f32 %v1283_v45, %v1282_v39  ;;  %v3873_v39 = vld [vmem:[#allocation11 + $0x3f8] ss:$12 sps:$4 sm:$0xff]  }
 0x53d   :  { %v1290_v51 = vrot.slane %v1289_v46, 2  ;;  %v3876_v45 = vld [vmem:[#allocation11 + $0x40c] ss:$12 sps:$4 sm:$0xff]  }
 0x53e   :  { %v1285_v52 = vrot.slane %v1284_v49, 1 }
 0x53f   :  { %v1291_v53 = vadd.f32 %v1290_v51, %v1289_v46 }
 0x540   :  { %v1286_v54 = vadd.f32 %v1285_v52, %v1284_v49 }
 0x541   :  { %v1292_v55 = vrot.slane %v1291_v53, 1 }
 0x542   :  { %v1294_v58 = vadd.f32 1e-09, %v1286_v54  ;;  %v3874_v54 = vld [vmem:[#allocation11 + $0x408] ss:$12 sps:$4 sm:$0xff]  }
 0x543   :  { %v1293_v56 = vadd.f32 %v1292_v55, %v1291_v53  ;;  %v3877_v55 = vld [vmem:[#allocation11 + $0x410] ss:$12 sps:$4 sm:$0xff]  }
 0x544   :  { %4022 = vrcp.f32 %v1294_v58 }
 0x545   :  { %v1295_v57 = vadd.f32 1e-09, %v1293_v56 }
 0x547   :  { %4024 = vrcp.f32 %v1295_v57 }
 0x54e   :  { %v4023_v59 = vpop.eup %4022 }
 0x54f   :  { %v1297_v60 = vmul.f32 %v4023_v59, %v1278_v29  ;;  %v3880_v59 = vld [vmem:[#allocation11 + $0x424] ss:$12 sps:$4 sm:$0xff]  }
 0x551   :  { %v4025_v63 = vpop.eup %4024  ;;  %v1300_v61 = vmul.f32 8.0, %v1297_v60 }
 0x552   :  { %v1299_v62 = vmul.f32 %v4025_v63, %v1279_v38  ;;  %v3870_v38 = vld [vmem:[#allocation11 + $0x3f0] ss:$12 sps:$4 sm:$0xff]  }
 0x553   :  { %1304 = vperm.xlu0 %3668, %v1300_v61  }
 0x554   :  { %v1301_v2 = vmul.f32 8.0, %v1299_v62 }
 0x556   :  { %1309 = vperm.xlu1 %3669, %v1301_v2   ;;  %v3878_v2 = vld [vmem:[#allocation11 + $0x420] ss:$12 sps:$4 sm:$0xff]  }
 0x557   :  { %2013 = vperm.xlu0 %3668, %v4675_v21  }
 0x55b   :  { %2018 = vperm.xlu0 %3668, %v4678_v28  }
 0x55f   :  { %2043 = vperm.xlu0 %3668, %v1297_v60  }
 0x563   :  { %2048 = vperm.xlu0 %3668, %v1299_v62  }
 0x5d2   :  { %v4739_v11 = vpop.permute.xlu0 %1304 }
 0x5d3   :  { %v1312_v21 = vmul.f32 %v4739_v11, %v4703_v3  ;;  %v1313_v44 = vmul.f32 %v4739_v11, %v4710_v8 }
 0x5d5   :  { %v4742_v13 = vpop.permute.xlu1 %1309 }
 0x5d6   :  { %v1315_v28 = vmul.f32 %v4742_v13, %v4715_v12  ;;  %v1316_v15 = vmul.f32 %v4742_v13, %v4722_v41  ;;  %v2014_v16 = vpop.permute.xlu0 %2013 }
 0x5d7   :  { %v2021_v30 = vmul.f32 %v3216_v40, %v2014_v16 }
 0x5d8   :  { %v1318_v33 = vpack.c.bf16 %v1315_v28, %v1312_v21  ;;  %v1319_v17 = vpack.c.bf16 %v1316_v15, %v1313_v44  ;;  %v3882_v21 = vld [vmem:[#allocation11 + $0x438] ss:$12 sps:$4 sm:$0xff]   ;;  %v3885_v44 = vld [vmem:[#allocation11 + $0x440] ss:$12 sps:$4 sm:$0xff]  }
 0x5d9   :  { %v2023_v19 = vrot.slane %v2021_v30, 4  ;;  %v3888_v15 = vld [vmem:[#allocation11 + $0x454] ss:$12 sps:$4 sm:$0xff]  }
 0x5da   :  { %1852 = vmatprep.mubr.bf16.mxu1 %v1319_v17  ;;  %1938 = vmatprep.mubr.bf16.mxu0 %v1319_v17  ;;  %v2019_v22 = vpop.permute.xlu0 %2018  ;;  %v3889_v17 = vld [vmem:[#allocation11 + $0x458] ss:$12 sps:$4 sm:$0xff]  }
 0x5db   :  { %v2024_v48 = vadd.f32 %v2023_v19, %v2021_v30  ;;  %1853 = vmatmul.mubr.bf16.vlgmr.msra.gmra.mrb[12].mxu1 %v1318_v33  ;;  %1939 = vmatmul.mubr.bf16.vlgmr.msra.gmra.mrb[8].mxu0 %v1318_v33  ;;  %v2022_v23 = vmul.f32 %v3216_v40, %v2019_v22  ;;  %v3886_v33 = vld [vmem:[#allocation11 + $0x450] ss:$12 sps:$4 sm:$0xff]   ;;  %v3890_v19 = vld [vmem:[#allocation11 + $0x468] ss:$12 sps:$4 sm:$0xff]   ;;  %v1317_v22 = vmul.f32 %v4742_v13, %v4719_v14 }
 0x5dc   :  { %1864 = vmatpush1.bf16.msra.mxu1 %v3862_v18  ;;  %3490 = vmatpush3.bf16.msra.mxu0 %v3865_v47  ;;  %v3892_v18 = vld [vmem:[#allocation11 + $0x46c] ss:$12 sps:$4 sm:$0xff]  }
 0x5dd   :  { %v2025_v25 = vrot.slane %v2024_v48, 2  ;;  %v2029_v26 = vrot.slane %v2022_v23, 4  ;;  %1865 = vmatprep.subr.bf16.mxu1 %v3868_v20  ;;  %3491 = vmatprep.subr.bf16.mxu0 %v4364_v1  ;;  %v3893_v20 = vld [vmem:[#allocation11 + $0x470] ss:$12 sps:$4 sm:$0xff]   ;;  %v3900_v13 = vld [vmem:[#allocation14 + $0x30] ss:$12 sps:$4 sm:$0xff]  }
 0x5de   :  { %v2044_v29 = vpop.permute.xlu0 %2043  ;;  %1895 = vmatprep.mubr.bf16.mxu1 %v4363_v0  ;;  %3505 = vmatprep.mubr.msk.bf16.mxu0 %vm4365_vm0, %v4364_v1 }
 0x5df   :  { %v2026_v31 = vadd.f32 %v2025_v25, %v2024_v48  ;;  %v2030_v32 = vadd.f32 %v2029_v26, %v2022_v23  ;;  %v2051_v36 = vmul.f32 %v3216_v40, %v2044_v29  ;;  %v1314_v48 = vmul.f32 %v4739_v11, %v4707_v6  ;;  %v3899_v25 = vld [vmem:[#allocation14 + $0x1c] ss:$12 sps:$4 sm:$0xff]   ;;  %v3897_v26 = vld [vmem:[#allocation14 + $0x18] ss:$12 sps:$4 sm:$0xff]  }
 0x5e0   :  { %1866 = vmatpush1.bf16.msra.mxu1 %v3866_v50  ;;  %3492 = vmatpush3.bf16.msra.mxu0 %v3869_v24  ;;  %v3894_v50 = vld [vmem:[#allocation14] ss:$12 sps:$4 sm:$0xff]   ;;  %v3896_v24 = vld [vmem:[#allocation14 + $0x4] ss:$12 sps:$4 sm:$0xff]  }
 0x5e1   :  { %v2031_v42 = vrot.slane %v2030_v32, 2  ;;  %v2053_v43 = vrot.slane %v2051_v36, 4  ;;  %1867 = vmatprep.subr.bf16.mxu1 %v3872_v27  ;;  %3493 = vmatprep.subr.bf16.mxu0 %v4364_v1  ;;  %v2027_v49 = vrot.slane %v2026_v31, 1  ;;  %v1320_v23 = vpack.c.bf16 %v1317_v22, %v1314_v48  ;;  %v3902_v27 = vld [vmem:[#allocation14 + $0x34] ss:$12 sps:$4 sm:$0xff]  }
 0x5e2   :  { %v2049_v46 = vpop.permute.xlu0 %2048  ;;  %v3905_v29 = vld [vmem:[#allocation14 + $0x4c] ss:$12 sps:$4 sm:$0xff]   ;;  %v3908_v11 = vld [vmem:[#allocation14 + $0x64] ss:$12 sps:$4 sm:$0xff]  }
 0x5e3   :  { %v2032_v51 = vadd.f32 %v2031_v42, %v2030_v32  ;;  %v2054_v52 = vadd.f32 %v2053_v43, %v2051_v36  ;;  %v2052_v53 = vmul.f32 %v3216_v40, %v2049_v46  ;;  %v2028_v60 = vadd.f32 %v2027_v49, %v2026_v31  ;;  %v3903_v31 = vld [vmem:[#allocation14 + $0x48] ss:$12 sps:$4 sm:$0xff]   ;;  %v3906_v32 = vld [vmem:[#allocation14 + $0x60] ss:$12 sps:$4 sm:$0xff]   ;;  %v3912_v42 = vld [vmem:[#allocation14 + $0x90] ss:$12 sps:$4 sm:$0xff]  }
 0x5e4   :  { %1868 = vmatpush1.bf16.msra.mxu1 %v3870_v38  ;;  %3494 = vmatpush3.bf16.msra.mxu0 %v3873_v39  ;;  %v3911_v36 = vld [vmem:[#allocation14 + $0x7c] ss:$12 sps:$4 sm:$0xff]   ;;  %v3909_v38 = vld [vmem:[#allocation14 + $0x78] ss:$12 sps:$4 sm:$0xff]   ;;  %v3914_v39 = vld [vmem:[#allocation14 + $0x94] ss:$12 sps:$4 sm:$0xff]  }
 0x5e5   :  { %v2033_v58 = vrot.slane %v2032_v51, 1  ;;  %v2055_v56 = vrot.slane %v2054_v52, 2  ;;  %v2059_v57 = vrot.slane %v2052_v53, 4  ;;  %1869 = vmatprep.subr.bf16.mxu1 %v3876_v45  ;;  %3495 = vmatprep.subr.bf16.mxu0 %v4364_v1  ;;  %v3917_v43 = vld [vmem:[#allocation14 + $0xac] ss:$12 sps:$4 sm:$0xff]  }
 0x5e6   :  { %v3915_v45 = vld [vmem:[#allocation14 + $0xa8] ss:$12 sps:$4 sm:$0xff]   ;;  %v3920_v46 = vld [vmem:[#allocation14 + $0xc4] ss:$12 sps:$4 sm:$0xff]  }
 0x5e7   :  { %v2034_v63 = vadd.f32 %v2033_v58, %v2032_v51  ;;  %v2056_v61 = vadd.f32 %v2055_v56, %v2054_v52  ;;  %v2060_v62 = vadd.f32 %v2059_v57, %v2052_v53  ;;  %v3921_v49 = vld [vmem:[#allocation14 + $0xc8] ss:$12 sps:$4 sm:$0xff]   ;;  %v3918_v51 = vld [vmem:[#allocation14 + $0xc0] ss:$12 sps:$4 sm:$0xff]   ;;  %v3931_v57 = vld [vmem:[#allocation14 + $0xf8] ss:$12 sps:$4 sm:$0xff]  }
 0x5e8   :  { %1870 = vmatpush1.bf16.msra.mxu1 %v3874_v54  ;;  %3496 = vmatpush3.bf16.msra.mxu0 %v3877_v55  ;;  %v3922_v52 = vld [vmem:[#allocation14 + $0x8] ss:$12 sps:$4 sm:$0xff]   ;;  %v3926_v54 = vld [vmem:[#allocation14 + $0xe0] ss:$12 sps:$4 sm:$0xff]   ;;  %v3923_v55 = vld [vmem:[#allocation14 + $0xd8] ss:$12 sps:$4 sm:$0xff]  }
 0x5e9   :  { %v2061_v5 = vrot.slane %v2060_v62, 2  ;;  %1871 = vmatprep.subr.bf16.mxu1 %v3880_v59  ;;  %3497 = vmatprep.subr.bf16.mxu0 %v4364_v1  ;;  %v2038_v9 = vsel %vm2037_vm6, %v2034_v63, %v2028_v60  ;;  %v2057_v10 = vrot.slane %v2056_v61, 1  ;;  %v3925_v53 = vld [vmem:[#allocation14 + $0xdc] ss:$12 sps:$4 sm:$0xff]   ;;  %v3927_v58 = vld [vmem:[#allocation14 + $0x20] ss:$12 sps:$4 sm:$0xff]  }
 0x5ea   :  { %2040 = vst [vmem:[#allocation21] sm:$0x3] %v2038_v9  ;;  %v3930_v56 = vld [vmem:[#allocation14 + $0xf4] ss:$12 sps:$4 sm:$0xff]   ;;  %v3928_v59 = vld [vmem:[#allocation14 + $0xf0] ss:$12 sps:$4 sm:$0xff]  }
 0x5eb   :  { %v2062_v40 = vadd.f32 %v2061_v5, %v2060_v62  ;;  %v2058_v16 = vadd.f32 %v2057_v10, %v2056_v61  ;;  %v3932_v60 = vld [vmem:[#allocation14 + $0x38] ss:$12 sps:$4 sm:$0xff]   ;;  %v3936_v61 = vld [vmem:[#allocation14 + $0x110] ss:$12 sps:$4 sm:$0xff]   ;;  %v3933_v62 = vld [vmem:[#allocation14 + $0x108] ss:$12 sps:$4 sm:$0xff]  }
 0x5ec   :  { %1872 = vmatpush1.bf16.msra.mxu1 %v3878_v2  ;;  %3498 = vmatpush3.bf16.msra.mxu0 %v3881_v4  ;;  %v3935_v63 = vld [vmem:[#allocation14 + $0x10c] ss:$12 sps:$4 sm:$0xff]   ;;  %v3937_v2 = vld [vmem:[#allocation14 + $0x50] ss:$12 sps:$4 sm:$0xff]   ;;  %v3941_v5 = vld [vmem:[#allocation14 + $0x128] ss:$12 sps:$4 sm:$0xff]  }
 0x5ed   :  { %v2063_v28 = vrot.slane %v2062_v40, 1  ;;  %1873 = vmatprep.subr.bf16.mxu1 %v3884_v7  ;;  %3499 = vmatprep.subr.bf16.mxu0 %v4364_v1  ;;  %v3940_v4 = vld [vmem:[#allocation14 + $0x124] ss:$12 sps:$4 sm:$0xff]   ;;  %v3938_v7 = vld [vmem:[#allocation14 + $0x120] ss:$12 sps:$4 sm:$0xff]  }
 0x5ee   :  { %v3942_v9 = vld [vmem:[#allocation14 + $0x68] ss:$12 sps:$4 sm:$0xff]  }
 0x5ef   :  { %v2064_v30 = vadd.f32 %v2063_v28, %v2062_v40  ;;  %v3945_v10 = vld [vmem:[#allocation14 + $0x13c] ss:$12 sps:$4 sm:$0xff]   ;;  %v3946_v40 = vld [vmem:[#allocation14 + $0x140] ss:$12 sps:$4 sm:$0xff]  }
 0x5f0   :  { %1874 = vmatpush1.bf16.msra.mxu1 %v3882_v21  ;;  %3500 = vmatpush3.bf16.msra.mxu0 %v3885_v44  ;;  %v3943_v21 = vld [vmem:[#allocation14 + $0x138] ss:$12 sps:$4 sm:$0xff]   ;;  %v3947_v44 = vld [vmem:[#allocation14 + $0x80] ss:$12 sps:$4 sm:$0xff]  }
 0x5f1   :  { %1875 = vmatprep.subr.bf16.mxu1 %v3888_v15  ;;  %3501 = vmatprep.subr.bf16.mxu0 %v4364_v1  ;;  %v2067_v47 = vsel %vm2037_vm6, %v2064_v30, %v2058_v16  ;;  %v3950_v28 = vld [vmem:[#allocation14 + $0x154] ss:$12 sps:$4 sm:$0xff]   ;;  %v3951_v15 = vld [vmem:[#allocation14 + $0x158] ss:$12 sps:$4 sm:$0xff]   ;;  %v3948_v16 = vld [vmem:[#allocation14 + $0x150] ss:$12 sps:$4 sm:$0xff]  }
 0x5f2   :  { %2070 = vst [vmem:[#allocation21 + $0x2] sm:$0x3] %v2067_v47  ;;  %v3952_v30 = vld [vmem:[#allocation14 + $0x98] ss:$12 sps:$4 sm:$0xff]   ;;  %v3957_v47 = vld [vmem:[#allocation14 + $0xb0] ss:$12 sps:$4 sm:$0xff]  }
 0x5f4   :  { %1876 = vmatpush1.bf16.msra.mxu1 %v3886_v33  ;;  %3502 = vmatpush3.bf16.msra.mxu0 %v3889_v17  ;;  %v3955_v33 = vld [vmem:[#allocation14 + $0x16c] ss:$12 sps:$4 sm:$0xff]   ;;  %v3956_v17 = vld [vmem:[#allocation14 + $0x170] ss:$12 sps:$4 sm:$0xff]  }
 0x5f5   :  { %1877 = vmatprep.subr.bf16.mxu1 %v3892_v18  ;;  %3503 = vmatprep.subr.bf16.mxu0 %v4364_v1  ;;  %v3953_v18 = vld [vmem:[#allocation14 + $0x168] ss:$12 sps:$4 sm:$0xff]  }
 0x5f8   :  { %1878 = vmatpush1.bf16.msra.mxu1 %v3890_v19  ;;  %3504 = vmatpush3.bf16.msra.mxu0 %v3893_v20  ;;  %v3960_v19 = vld [vmem:[#allocation14 + $0x184] ss:$12 sps:$4 sm:$0xff]  }
 0x5f9   :  { %2644 = vmatprep.subr.bf16.mxu0 %v3896_v24  ;;  %3366 = vmatprep.subr.bf16.mxu1 %v3921_v49 }
 0x5fb   :  { %1896 = vmatmul.mubr.bf16.vlgmr.msra.gmra.mrb[12].mxu1 %v1320_v23  ;;  %3506 = vmatmul.mubr.bf16.vlgmr.msra.gmra.mrb[12].mxu0 %v1320_v23 }
 0x5fc   :  { %2645 = vmatpush1.bf16.msra.mxu0 %v3894_v50  ;;  %3367 = vmatpush3.bf16.msra.mxu1 %v3922_v52 }
 0x5fd   :  { %2646 = vmatprep.subr.bf16.mxu0 %v3899_v25  ;;  %3368 = vmatprep.subr.bf16.mxu1 %v3926_v54  ;;  %v1419_v25 = vld [vmem:[#allocation13 + $0x3] sm:$0x7] }
 0x600   :  { %2647 = vmatpush1.bf16.msra.mxu0 %v3897_v26  ;;  %3369 = vmatpush3.bf16.msra.mxu1 %v3927_v58  ;;  %v1432_v26 = vrot.slane %v1419_v25, %v4644_v37 }
 0x601   :  { %2648 = vmatprep.subr.bf16.mxu0 %v3902_v27  ;;  %3370 = vmatprep.subr.bf16.mxu1 %v3931_v57  ;;  %v1424_v27 = vrot.slane %v1419_v25, %v4638_v34 }
 0x604   :  { %2649 = vmatpush1.bf16.msra.mxu0 %v3900_v13  ;;  %3371 = vmatpush3.bf16.msra.mxu1 %v3932_v60  ;;  %v1428_v13 = vrot.slane %v1419_v25, %v4641_v35 }
 0x605   :  { %2650 = vmatprep.subr.bf16.mxu0 %v3905_v29  ;;  %3372 = vmatprep.subr.bf16.mxu1 %v3936_v61 }
 0x608   :  { %2651 = vmatpush1.bf16.msra.mxu0 %v3903_v31  ;;  %3373 = vmatpush3.bf16.msra.mxu1 %v3937_v2 }
 0x609   :  { %2652 = vmatprep.subr.bf16.mxu0 %v3908_v11  ;;  %3374 = vmatprep.subr.bf16.mxu1 %v3941_v5 }
 0x60c   :  { %2653 = vmatpush1.bf16.msra.mxu0 %v3906_v32  ;;  %3375 = vmatpush3.bf16.msra.mxu1 %v3942_v9 }
 0x60d   :  { %2654 = vmatprep.subr.bf16.mxu0 %v3911_v36  ;;  %3376 = vmatprep.subr.bf16.mxu1 %v3946_v40 }
 0x610   :  { %2655 = vmatpush1.bf16.msra.mxu0 %v3909_v38  ;;  %3377 = vmatpush3.bf16.msra.mxu1 %v3947_v44 }
 0x611   :  { %2656 = vmatprep.subr.bf16.mxu0 %v3914_v39  ;;  %3378 = vmatprep.subr.bf16.mxu1 %v3951_v15 }
 0x614   :  { %2657 = vmatpush1.bf16.msra.mxu0 %v3912_v42  ;;  %3379 = vmatpush3.bf16.msra.mxu1 %v3952_v30 }
 0x615   :  { %2658 = vmatprep.subr.bf16.mxu0 %v3917_v43  ;;  %3380 = vmatprep.subr.bf16.mxu1 %v3956_v17 }
 0x618   :  { %2659 = vmatpush1.bf16.msra.mxu0 %v3915_v45  ;;  %3381 = vmatpush3.bf16.msra.mxu1 %v3957_v47 }
 0x619   :  { %2660 = vmatprep.subr.bf16.mxu0 %v3920_v46  ;;  %3509 = vmatprep.subr.bf16.mxu1 %v4364_v1 }
 0x61c   :  { %2661 = vmatpush1.bf16.msra.mxu0 %v3918_v51 }
 0x61d   :  { %2662 = vmatprep.subr.bf16.mxu0 %v3925_v53 }
 0x620   :  { %2663 = vmatpush1.bf16.msra.mxu0 %v3923_v55 }
 0x621   :  { %2664 = vmatprep.subr.bf16.mxu0 %v3930_v56 }
 0x624   :  { %2665 = vmatpush1.bf16.msra.mxu0 %v3928_v59 }
 0x625   :  { %2666 = vmatprep.subr.bf16.mxu0 %v3935_v63 }
 0x628   :  { %2667 = vmatpush1.bf16.msra.mxu0 %v3933_v62 }
 0x629   :  { %2668 = vmatprep.subr.bf16.mxu0 %v3940_v4 }
 0x62c   :  { %2669 = vmatpush1.bf16.msra.mxu0 %v3938_v7 }
 0x62d   :  { %2670 = vmatprep.subr.bf16.mxu0 %v3945_v10 }
 0x630   :  { %2671 = vmatpush1.bf16.msra.mxu0 %v3943_v21 }
 0x631   :  { %2672 = vmatprep.subr.bf16.mxu0 %v3950_v28 }
 0x634   :  { %2673 = vmatpush1.bf16.msra.mxu0 %v3948_v16 }
 0x635   :  { %2674 = vmatprep.subr.bf16.mxu0 %v3955_v33 }
 0x638   :  { %2675 = vmatpush1.bf16.msra.mxu0 %v3953_v18 }
 0x639   :  { %2685 = vmatprep.subr.bf16.mxu0 %v3960_v19 }
 0x6ae   :  { %v3351_v20 = vpop.f32.mrb[8].mxu0 }
 0x6af   :  { %v3352_v22 = vpop.f32.mrb[9].mxu0 }
 0x6b0   :  { %v3353_v48 = vadd.f32 %v3352_v22, %v3351_v20  ;;  %v3354_v23 = vpop.f32.mrb[10].mxu0 }
 0x6b1   :  { %v3355_v50 = vpop.f32.mrb[11].mxu0 }
 0x6b2   :  { %v3356_v24 = vadd.f32 %v3355_v50, %v3354_v23  ;;  %v1941_v29 = vadd.f32 %v3353_v48, %v1432_v26 }
 0x6b4   :  { %v1944_v42 = vadd.f32 %v3356_v24, %v1432_v26 }
 0x6ce   :  { %v1897_v31 = vpop.f32.mrb[12].mxu1  ;;  %v1981_v11 = vpop.f32.mrb[12].mxu0 }
 0x6cf   :  { %v3624_v32 = vadd.f32 %v1897_v31, %v1424_v27  ;;  %v1982_v36 = vadd.f32 %v1981_v11, %v1941_v29  ;;  %v1899_v38 = vpop.f32.mrb[13].mxu1  ;;  %v3507_v39 = vpop.f32.mrb[13].mxu0 }
 0x6d0   :  { %v3625_v43 = vadd.f32 %v1899_v38, %v1428_v13  ;;  %v1901_v45 = vpop.f32.mrb[14].mxu1  ;;  %v1984_v46 = vpop.f32.mrb[14].mxu0 }
 0x6d1   :  { %4026 = vtanh.f32 %v3624_v32  ;;  %v3626_v49 = vadd.f32 %v1901_v45, %v1424_v27  ;;  %v1985_v51 = vadd.f32 %v1984_v46, %v1944_v42  ;;  %v1903_v52 = vpop.f32.mrb[15].mxu1  ;;  %v3508_v53 = vpop.f32.mrb[15].mxu0 }
 0x6d2   :  { %4028 = vtanh.f32 %v1982_v36  ;;  %v3627_v54 = vadd.f32 %v1903_v52, %v1428_v13 }
 0x6d3   :  { %4030 = vtanh.f32 %v3625_v43 }
 0x6d4   :  { %4032 = vtanh.f32 %v3626_v49 }
 0x6d5   :  { %4034 = vtanh.f32 %v1985_v51 }
 0x6d6   :  { %4036 = vtanh.f32 %v3627_v54 }
 0x6db   :  { %v4027_v55 = vpop.eup %4026 }
 0x6dc   :  { %v4029_v58 = vpop.eup %4028  ;;  %v1994_v56 = vadd.f32 %v4027_v55, %v4703_v3 }
 0x6dd   :  { %v4031_v57 = vpop.eup %4030  ;;  %v1996_v59 = vadd.f32 %v4029_v58, %v4707_v6 }
 0x6de   :  { %v4033_v60 = vpop.eup %4032  ;;  %v2000_v63 = vadd.f32 %v1994_v56, %v4703_v3  ;;  %v1995_v61 = vadd.f32 %v4031_v57, %v4710_v8 }
 0x6df   :  { %v4035_v62 = vpop.eup %4034  ;;  %v2002_v2 = vadd.f32 %v1996_v59, %v4707_v6  ;;  %v1997_v4 = vadd.f32 %v4033_v60, %v4715_v12 }
 0x6e0   :  { %v4037_v5 = vpop.eup %4036  ;;  %v2071_v7 = vmul.f32 0.5, %v2000_v63  ;;  %v2001_v9 = vadd.f32 %v1995_v61, %v4710_v8  ;;  %v1999_v10 = vadd.f32 %v4035_v62, %v4719_v14 }
 0x6e1   :  { %v2073_v40 = vmul.f32 0.5, %v2002_v2  ;;  %v2003_v21 = vadd.f32 %v1997_v4, %v4715_v12  ;;  %v1998_v44 = vadd.f32 %v4037_v5, %v4722_v41 }
 0x6e2   :  { %v2077_v28 = vrot.slane %v2071_v7, 4  ;;  %v2072_v3 = vmul.f32 0.5, %v2001_v9  ;;  %v2005_v15 = vadd.f32 %v1999_v10, %v4719_v14 }
 0x6e3   :  { %v2089_v16 = vrot.slane %v2073_v40, 4  ;;  %v2074_v30 = vmul.f32 0.5, %v2003_v21  ;;  %v2004_v6 = vadd.f32 %v1998_v44, %v4722_v41 }
 0x6e4   :  { %v2078_v33 = vadd.f32 %v2077_v28, %v2071_v7  ;;  %v2076_v17 = vmul.f32 0.5, %v2005_v15  ;;  %v2083_v18 = vrot.slane %v2072_v3, 4 }
 0x6e5   :  { %v2090_v47 = vadd.f32 %v2089_v16, %v2073_v40  ;;  %v2095_v8 = vrot.slane %v2074_v30, 4  ;;  %v2075_v19 = vmul.f32 0.5, %v2004_v6  ;;  %v3958_v6 = vld [vmem:[#allocation14 + $0x180] ss:$12 sps:$4 sm:$0xff]  }
 0x6e6   :  { %v2107_v20 = vrot.slane %v2076_v17, 4  ;;  %v2084_v22 = vadd.f32 %v2083_v18, %v2072_v3  ;;  %v2079_v48 = vrot.slane %v2078_v33, 2  ;;  %v3964_v18 = vld [vmem:[#allocation14 + $0x19c] ss:$12 sps:$4 sm:$0xff]  }
 0x6e7   :  { %v2096_v12 = vadd.f32 %v2095_v8, %v2074_v30  ;;  %v2101_v23 = vrot.slane %v2075_v19, 4  ;;  %v2091_v50 = vrot.slane %v2090_v47, 2  ;;  %v3965_v8 = vld [vmem:[#allocation14 + $0x1a0] ss:$12 sps:$4 sm:$0xff]  }
 0x6e8   :  { %v2108_v24 = vadd.f32 %v2107_v20, %v2076_v17  ;;  %v2085_v25 = vrot.slane %v2084_v22, 2  ;;  %v2080_v26 = vadd.f32 %v2079_v48, %v2078_v33  ;;  %v3961_v33 = vld [vmem:[#allocation14 + $0x188] ss:$12 sps:$4 sm:$0xff]   ;;  %v3966_v20 = vld [vmem:[#allocation14 + $0x1b0] ss:$12 sps:$4 sm:$0xff]  }
 0x6e9   :  { %v2102_v14 = vadd.f32 %v2101_v23, %v2075_v19  ;;  %v2097_v27 = vrot.slane %v2096_v12, 2  ;;  %v2092_v13 = vadd.f32 %v2091_v50, %v2090_v47  ;;  %v3962_v47 = vld [vmem:[#allocation14 + $0x198] ss:$12 sps:$4 sm:$0xff]   ;;  %v3968_v19 = vld [vmem:[#allocation14 + $0x1b4] ss:$12 sps:$4 sm:$0xff]  }
 0x6ea   :  { %v2086_v29 = vadd.f32 %v2085_v25, %v2084_v22  ;;  %v2081_v41 = vrot.slane %v2080_v26, 1  ;;  %v2109_v31 = vrot.slane %v2108_v24, 2  ;;  %v3969_v22 = vld [vmem:[#allocation14 + $0x1b8] ss:$12 sps:$4 sm:$0xff]   ;;  %v3973_v23 = vld [vmem:[#allocation14 + $0x1d0] ss:$12 sps:$4 sm:$0xff]  }
 0x6eb   :  { %v2103_v11 = vrot.slane %v2102_v14, 2  ;;  %v2098_v32 = vadd.f32 %v2097_v27, %v2096_v12  ;;  %v2093_v36 = vrot.slane %v2092_v13, 1  ;;  %v3972_v48 = vld [vmem:[#allocation14 + $0x1cc] ss:$12 sps:$4 sm:$0xff]   ;;  %v3970_v12 = vld [vmem:[#allocation14 + $0x1c8] ss:$12 sps:$4 sm:$0xff]  }
 0x6ec   :  { %v2087_v38 = vrot.slane %v2086_v29, 1  ;;  %v2082_v39 = vadd.f32 %v2081_v41, %v2080_v26  ;;  %v2110_v42 = vadd.f32 %v2109_v31, %v2108_v24  ;;  %v3976_v50 = vld [vmem:[#allocation14 + $0x1e4] ss:$12 sps:$4 sm:$0xff]   ;;  %v3977_v24 = vld [vmem:[#allocation14 + $0x1e8] ss:$12 sps:$4 sm:$0xff]  }
 0x6ed   :  { %v2104_v43 = vadd.f32 %v2103_v11, %v2102_v14  ;;  %v2099_v45 = vrot.slane %v2098_v32, 1  ;;  %v2094_v46 = vadd.f32 %v2093_v36, %v2092_v13  ;;  %v3980_v25 = vld [vmem:[#allocation14 + $0x1fc] ss:$12 sps:$4 sm:$0xff]   ;;  %v3978_v26 = vld [vmem:[#allocation14 + $0x1f8] ss:$12 sps:$4 sm:$0xff]  }
 0x6ee   :  { %v2088_v49 = vadd.f32 %v2087_v38, %v2086_v29  ;;  %v2114_v51 = vmul.f32 0.125, %v2082_v39  ;;  %v2111_v52 = vrot.slane %v2110_v42, 1  ;;  %v3981_v14 = vld [vmem:[#allocation14 + $0x200] ss:$12 sps:$4 sm:$0xff]   ;;  %v3982_v13 = vld [vmem:[#allocation14 + $0x210] ss:$12 sps:$4 sm:$0xff]  }
 0x6ef   :  { %v2105_v53 = vrot.slane %v2104_v43, 1  ;;  %v2100_v54 = vadd.f32 %v2099_v45, %v2098_v32  ;;  %v2116_v55 = vmul.f32 0.125, %v2094_v46  ;;  %v3984_v27 = vld [vmem:[#allocation14 + $0x214] ss:$12 sps:$4 sm:$0xff]   ;;  %v3985_v29 = vld [vmem:[#allocation14 + $0x218] ss:$12 sps:$4 sm:$0xff]  }
 0x6f0   :  { %v2115_v58 = vmul.f32 0.125, %v2088_v49  ;;  %v2112_v56 = vadd.f32 %v2111_v52, %v2110_v42  ;;  %v2120_v60 = vpack.c.bf16 %v2114_v51, %v2114_v51  ;;  %v3988_v41 = vld [vmem:[#allocation14 + $0x22c] ss:$12 sps:$4 sm:$0xff]   ;;  %v3986_v31 = vld [vmem:[#allocation14 + $0x228] ss:$12 sps:$4 sm:$0xff]   ;;  %v4367_v42 = vmov 0.0|0.0  }
 0x6f1   :  { %v2106_v57 = vadd.f32 %v2105_v53, %v2104_v43  ;;  %v2117_v59 = vmul.f32 0.125, %v2100_v54  ;;  %v2122_v61 = vpack.c.bf16 %v2116_v55, %v2116_v55  ;;  %v3989_v11 = vld [vmem:[#allocation14 + $0x230] ss:$12 sps:$4 sm:$0xff]   ;;  %v2841_v36 = vld [vmem:[#allocation17 + $0x100] sm:$0xff]  ;;  %v2843_v53 = vld [vmem:[#allocation17 + $0x110] sm:$0xff] }
 0x6f2   :  { %v2119_v63 = vmul.f32 0.125, %v2112_v56  ;;  %v2121_v2 = vpack.c.bf16 %v2115_v58, %v2115_v58  ;;  %v2245_v9 = vunpack.c.l.b16 %v2120_v60  ;;  %v2842_v38 = vld [vmem:[#allocation17 + $0x108] sm:$0xff]  ;;  %v2825_v39 = vld [vmem:[#allocation17 + $0x80] sm:$0xff]  ;;  %v2844_v54 = vld [vmem:[#allocation17 + $0x118] sm:$0xff] }
 0x6f3   :  { %v2118_v62 = vmul.f32 0.125, %v2106_v57  ;;  %v2123_v4 = vpack.c.bf16 %v2117_v59, %v2117_v59  ;;  %v2247_v40 = vunpack.c.l.b16 %v2122_v61  ;;  %v3597_v43 = vpack.c.bf16 %v2842_v38, %v2841_v36  ;;  %v2826_v45 = vld [vmem:[#allocation17 + $0x88] sm:$0xff]  ;;  %v2809_v46 = vld [vmem:[#allocation17] sm:$0xff]  ;;  %v2827_v55 = vld [vmem:[#allocation17 + $0x90] sm:$0xff] }
 0x6f4   :  { %v2125_v5 = vpack.c.bf16 %v2119_v63, %v2119_v63  ;;  %v2246_v44 = vunpack.c.l.b16 %v2121_v2  ;;  %v2810_v49 = vld [vmem:[#allocation17 + $0x8] sm:$0xff]  ;;  %v3564_v51 = vpack.c.bf16 %v2826_v45, %v2825_v39  ;;  %v3600_v58 = vpack.c.bf16 %v2844_v54, %v2843_v53  ;;  %v2828_v56 = vld [vmem:[#allocation17 + $0x98] sm:$0xff]  ;;  %v2811_v57 = vld [vmem:[#allocation17 + $0x10] sm:$0xff] }
 0x6f5   :  { %v2124_v7 = vpack.c.bf16 %v2118_v62, %v2118_v62  ;;  %v2248_v10 = vunpack.c.l.b16 %v2123_v4  ;;  %v3566_v52 = vpack.c.bf16 %v2810_v49, %v2809_v46  ;;  %v3568_v59 = vpack.c.bf16 %v2828_v56, %v2827_v55  ;;  %v2845_v60 = vld [vmem:[#allocation17 + $0x120] sm:$0xff]  ;;  %v2846_v63 = vld [vmem:[#allocation17 + $0x128] sm:$0xff]  ;;  %v2856_v45 = vld [vmem:[#allocation17 + $0x178] sm:$0xff] }
 0x6f6   :  { %v2250_v21 = vunpack.c.l.b16 %v2125_v5  ;;  %v2829_v61 = vld [vmem:[#allocation17 + $0xa0] sm:$0xff]  ;;  %v2830_v2 = vld [vmem:[#allocation17 + $0xa8] sm:$0xff]  ;;  %v2839_v46 = vld [vmem:[#allocation17 + $0xf0] sm:$0xff] }
 0x6f7   :  { %v2249_v28 = vunpack.c.l.b16 %v2124_v7  ;;  %v2251_v3 = vsel %vm2037_vm6, %v2248_v10, %v2245_v9  ;;  %v3572_v4 = vpack.c.bf16 %v2830_v2, %v2829_v61  ;;  %v2813_v5 = vld [vmem:[#allocation17 + $0x20] sm:$0xff]  ;;  %v2814_v7 = vld [vmem:[#allocation17 + $0x28] sm:$0xff]  ;;  %v3603_v9 = vpack.c.bf16 %v2846_v63, %v2845_v60  ;;  %v2831_v10 = vld [vmem:[#allocation17 + $0xb0] sm:$0xff] }
 0x6f8   :  { %v2253_v15 = vsel %vm2037_vm6, %v2250_v21, %v2247_v40  ;;  %v2254_v17 = vpack.c.b16 %v2251_v3, %v2251_v3  ;;  %v2832_v40 = vld [vmem:[#allocation17 + $0xb8] sm:$0xff]  ;;  %v2847_v21 = vld [vmem:[#allocation17 + $0x130] sm:$0xff]  ;;  %v2822_v36 = vld [vmem:[#allocation17 + $0x68] sm:$0xff] }
 0x6f9   :  { %v2252_v16 = vsel %vm2037_vm6, %v2249_v28, %v2246_v44  ;;  %v2256_v32 = vpack.c.b16 %v2253_v15, %v2253_v15  ;;  %v2848_v44 = vld [vmem:[#allocation17 + $0x138] sm:$0xff]  ;;  %v3574_v28 = vpack.c.bf16 %v2814_v7, %v2813_v5  ;;  %v3576_v3 = vpack.c.bf16 %v2832_v40, %v2831_v10  ;;  %v2815_v15 = vld [vmem:[#allocation17 + $0x30] sm:$0xff] }
 0x6fa   :  { %v2255_v30 = vpack.c.b16 %v2252_v16, %v2252_v16  ;;  %v2816_v16 = vld [vmem:[#allocation17 + $0x38] sm:$0xff] }
 0x6fb   :  { %v2824_v53 = vld [vmem:[#allocation17 + $0x78] sm:$0xff] }
 0x6fc   :  { %2676 = vmatprep.mubr.bf16.mxu0 %v2255_v30  ;;  %2758 = vmatprep.mubr.bf16.mxu1 %v2255_v30  ;;  %v3606_v30 = vpack.c.bf16 %v2848_v44, %v2847_v21  ;;  %v2222_v60 = vld [vmem:[#allocation16] sm:$0x7] }
 0x6fd   :  { %2677 = vmatmul.mubr.bf16.vlgmr.msra.gmra.mrb[16].mxu0 %v2254_v17  ;;  %2759 = vmatmul.mubr.bf16.vlgmr.msra.gmra.mrb[16].mxu1 %v2254_v17  ;;  %v3578_v17 = vpack.c.bf16 %v2816_v16, %v2815_v15  ;;  %v2235_v63 = vrot.slane %v2222_v60, %v4644_v37  ;;  %v2227_v61 = vrot.slane %v2222_v60, %v4638_v34 }
 0x6fe   :  { %2686 = vmatpush1.bf16.msra.mxu0 %v3958_v6  ;;  %3510 = vmatpush3.bf16.msra.mxu1 %v3961_v33  ;;  %v2849_v6 = vld [vmem:[#allocation17 + $0x140] sm:$0xff]  ;;  %v2850_v33 = vld [vmem:[#allocation17 + $0x148] sm:$0xff] }
 0x6ff   :  { %2687 = vmatprep.subr.bf16.mxu0 %v3964_v18  ;;  %3511 = vmatprep.subr.bf16.mxu1 %v4364_v1  ;;  %v3609_v18 = vpack.c.bf16 %v2850_v33, %v2849_v6 }
 0x700   :  { %2717 = vmatprep.mubr.bf16.mxu0 %v4363_v0  ;;  %3525 = vmatprep.mubr.msk.bf16.mxu1 %vm4365_vm0, %v4364_v1  ;;  %v3974_v0 = vld [vmem:[#allocation14 + $0x1e0] ss:$12 sps:$4 sm:$0xff]  }
 0x702   :  { %2688 = vmatpush1.bf16.msra.mxu0 %v3962_v47  ;;  %3512 = vmatpush3.bf16.msra.mxu1 %v3965_v8  ;;  %v2833_v47 = vld [vmem:[#allocation17 + $0xc0] sm:$0xff]  ;;  %v2834_v8 = vld [vmem:[#allocation17 + $0xc8] sm:$0xff] }
 0x703   :  { %2689 = vmatprep.subr.bf16.mxu0 %v3968_v19  ;;  %3513 = vmatprep.subr.bf16.mxu1 %v4364_v1  ;;  %v3580_v19 = vpack.c.bf16 %v2834_v8, %v2833_v47 }
 0x706   :  { %2690 = vmatpush1.bf16.msra.mxu0 %v3966_v20  ;;  %3514 = vmatpush3.bf16.msra.mxu1 %v3969_v22  ;;  %v2817_v20 = vld [vmem:[#allocation17 + $0x40] sm:$0xff]  ;;  %v2818_v22 = vld [vmem:[#allocation17 + $0x48] sm:$0xff] }
 0x707   :  { %2691 = vmatprep.subr.bf16.mxu0 %v3972_v48  ;;  %3515 = vmatprep.subr.bf16.mxu1 %v4364_v1  ;;  %v3582_v48 = vpack.c.bf16 %v2818_v22, %v2817_v20 }
 0x70a   :  { %2692 = vmatpush1.bf16.msra.mxu0 %v3970_v12  ;;  %3516 = vmatpush3.bf16.msra.mxu1 %v3973_v23  ;;  %v2851_v12 = vld [vmem:[#allocation17 + $0x150] sm:$0xff]  ;;  %v2852_v23 = vld [vmem:[#allocation17 + $0x158] sm:$0xff] }
 0x70b   :  { %2693 = vmatprep.subr.bf16.mxu0 %v3976_v50  ;;  %3517 = vmatprep.subr.bf16.mxu1 %v4364_v1  ;;  %v3612_v50 = vpack.c.bf16 %v2852_v23, %v2851_v12 }
 0x70e   :  { %2694 = vmatpush1.bf16.msra.mxu0 %v3974_v0  ;;  %3518 = vmatpush3.bf16.msra.mxu1 %v3977_v24  ;;  %v2835_v0 = vld [vmem:[#allocation17 + $0xd0] sm:$0xff]  ;;  %v2836_v24 = vld [vmem:[#allocation17 + $0xd8] sm:$0xff] }
 0x70f   :  { %2695 = vmatprep.subr.bf16.mxu0 %v3980_v25  ;;  %3519 = vmatprep.subr.bf16.mxu1 %v4364_v1  ;;  %v3584_v25 = vpack.c.bf16 %v2836_v24, %v2835_v0 }
 0x712   :  { %2696 = vmatpush1.bf16.msra.mxu0 %v3978_v26  ;;  %3520 = vmatpush3.bf16.msra.mxu1 %v3981_v14  ;;  %v2819_v26 = vld [vmem:[#allocation17 + $0x50] sm:$0xff]  ;;  %v2820_v14 = vld [vmem:[#allocation17 + $0x58] sm:$0xff] }
 0x713   :  { %2697 = vmatprep.subr.bf16.mxu0 %v3984_v27  ;;  %3521 = vmatprep.subr.bf16.mxu1 %v4364_v1  ;;  %v3586_v27 = vpack.c.bf16 %v2820_v14, %v2819_v26 }
 0x716   :  { %2698 = vmatpush1.bf16.msra.mxu0 %v3982_v13  ;;  %3522 = vmatpush3.bf16.msra.mxu1 %v3985_v29  ;;  %v2853_v13 = vld [vmem:[#allocation17 + $0x160] sm:$0xff]  ;;  %v2854_v29 = vld [vmem:[#allocation17 + $0x168] sm:$0xff] }
 0x717   :  { %2699 = vmatprep.subr.bf16.mxu0 %v3988_v41  ;;  %3523 = vmatprep.subr.bf16.mxu1 %v4364_v1  ;;  %v2837_v41 = vld [vmem:[#allocation17 + $0xe0] sm:$0xff] }
 0x71a   :  { %2700 = vmatpush1.bf16.msra.mxu0 %v3986_v31  ;;  %3524 = vmatpush3.bf16.msra.mxu1 %v3989_v11  ;;  %v3615_v31 = vpack.c.bf16 %v2854_v29, %v2853_v13  ;;  %v2838_v11 = vld [vmem:[#allocation17 + $0xe8] sm:$0xff] }
 0x71b   :  { %3596 = vmatprep.subr.bf16.mxu0 %v4367_v42  ;;  %3565 = vmatprep.subr.bf16.mxu1 %v3564_v51  ;;  %v3588_v38 = vpack.c.bf16 %v2838_v11, %v2837_v41  ;;  %v2840_v51 = vld [vmem:[#allocation17 + $0xf8] sm:$0xff] }
 0x71c   :  { %v3592_v54 = vpack.c.bf16 %v2840_v51, %v2839_v46 }
 0x71d   :  { %2718 = vmatmul.mubr.bf16.vlgmr.msra.gmra.mrb[16].mxu0 %v2256_v32  ;;  %3526 = vmatmul.mubr.bf16.vlgmr.msra.gmra.mrb[20].mxu1 %v2256_v32  ;;  %v2821_v32 = vld [vmem:[#allocation17 + $0x60] sm:$0xff] }
 0x71e   :  { %3561 = vmatprep.mubr.msk.f32.mxu0 %vm4365_vm0, %v4364_v1  ;;  %3598 = vmatpush3.bf16.msra.mxu0 %v3597_v43  ;;  %v2812_v1 = vld [vmem:[#allocation17 + $0x18] sm:$0xff]  ;;  %v3590_v39 = vpack.c.bf16 %v2822_v36, %v2821_v32  ;;  %v2855_v43 = vld [vmem:[#allocation17 + $0x170] sm:$0xff] }
 0x71f   :  { %3599 = vmatprep.subr.bf16.mxu0 %v4367_v42  ;;  %3567 = vmatpush3.bf16.msra.mxu1 %v3566_v52  ;;  %v3570_v62 = vpack.c.bf16 %v2812_v1, %v2811_v57  ;;  %v3618_v49 = vpack.c.bf16 %v2856_v45, %v2855_v43  ;;  %v2823_v52 = vld [vmem:[#allocation17 + $0x70] sm:$0xff] }
 0x720   :  { %3569 = vmatprep.subr.bf16.mxu1 %v3568_v59  ;;  %v3594_v55 = vpack.c.bf16 %v2824_v53, %v2823_v52 }
 0x722   :  { %3601 = vmatpush3.bf16.msra.mxu0 %v3600_v58 }
 0x723   :  { %3602 = vmatprep.subr.bf16.mxu0 %v4367_v42  ;;  %3571 = vmatpush3.bf16.msra.mxu1 %v3570_v62  ;;  %v2231_v62 = vrot.slane %v2222_v60, %v4641_v35 }
 0x724   :  { %3573 = vmatprep.subr.bf16.mxu1 %v3572_v4 }
 0x726   :  { %3604 = vmatpush3.bf16.msra.mxu0 %v3603_v9 }
 0x727   :  { %3605 = vmatprep.subr.bf16.mxu0 %v4367_v42  ;;  %3575 = vmatpush3.bf16.msra.mxu1 %v3574_v28 }
 0x728   :  { %3577 = vmatprep.subr.bf16.mxu1 %v3576_v3 }
 0x72a   :  { %3607 = vmatpush3.bf16.msra.mxu0 %v3606_v30 }
 0x72b   :  { %3608 = vmatprep.subr.bf16.mxu0 %v4367_v42  ;;  %3579 = vmatpush3.bf16.msra.mxu1 %v3578_v17 }
 0x72c   :  { %3581 = vmatprep.subr.bf16.mxu1 %v3580_v19 }
 0x72e   :  { %3610 = vmatpush3.bf16.msra.mxu0 %v3609_v18 }
 0x72f   :  { %3611 = vmatprep.subr.bf16.mxu0 %v4367_v42  ;;  %3583 = vmatpush3.bf16.msra.mxu1 %v3582_v48 }
 0x730   :  { %3585 = vmatprep.subr.bf16.mxu1 %v3584_v25 }
 0x732   :  { %3613 = vmatpush3.bf16.msra.mxu0 %v3612_v50 }
 0x733   :  { %3614 = vmatprep.subr.bf16.mxu0 %v4367_v42  ;;  %3587 = vmatpush3.bf16.msra.mxu1 %v3586_v27 }
 0x734   :  { %3589 = vmatprep.subr.bf16.mxu1 %v3588_v38 }
 0x736   :  { %3616 = vmatpush3.bf16.msra.mxu0 %v3615_v31 }
 0x737   :  { %3617 = vmatprep.subr.bf16.mxu0 %v4367_v42  ;;  %3591 = vmatpush3.bf16.msra.mxu1 %v3590_v39 }
 0x738   :  { %3593 = vmatprep.subr.bf16.mxu1 %v3592_v54 }
 0x73a   :  { %3619 = vmatpush3.bf16.msra.mxu0 %v3618_v49 }
 0x73b   :  { %3595 = vmatpush3.bf16.msra.mxu1 %v3594_v55 }
 0x7d0   :  { %v3382_v58 = vpop.f32.mrb[16].mxu1 }
 0x7d1   :  { %v3383_v56 = vpop.f32.mrb[17].mxu1 }
 0x7d2   :  { %v3384_v57 = vadd.f32 %v3383_v56, %v3382_v58  ;;  %v3385_v1 = vpop.f32.mrb[18].mxu1 }
 0x7d3   :  { %v3386_v59 = vpop.f32.mrb[19].mxu1 }
 0x7d4   :  { %v2761_v2 = vadd.f32 %v3384_v57, %v2235_v63 }
 0x7f0   :  { %v2719_v42 = vpop.f32.mrb[16].mxu0  ;;  %v2800_v4 = vpop.f32.mrb[20].mxu1 }
 0x7f1   :  { %v2801_v5 = vadd.f32 %v2800_v4, %v2761_v2  ;;  %v2721_v7 = vpop.f32.mrb[17].mxu0  ;;  %v3527_v9 = vpop.f32.mrb[21].mxu1  ;;  %v3628_v10 = vadd.f32 %v2719_v42, %v2227_v61 }
 0x7f2   :  { %v3629_v40 = vadd.f32 %v2721_v7, %v2231_v62  ;;  %v2723_v21 = vpop.f32.mrb[18].mxu0  ;;  %v2803_v44 = vpop.f32.mrb[22].mxu1 }
 0x7f3   :  { %v2724_v28 = vpop.f32.mrb[19].mxu0  ;;  %v3528_v3 = vpop.f32.mrb[23].mxu1  ;;  %4038 = vtanh.f32 %v2801_v5 }
 0x7f4   :  { %4040 = vtanh.f32 %v3629_v40 }
 0x7f5   :  { %4042 = vtanh.f32 %v3628_v10 }
 0x7fd   :  { %v4039_v37 = vpop.eup %4038 }
 0x7fe   :  { %v4041_v15 = vpop.eup %4040  ;;  %3562 = vmatmul.mubr.f32.vlgmr.msra.gmra.mrb[20].mxu0 %v4039_v37 }
 0x7ff   :  { %v4043_v34 = vpop.eup %4042  ;;  %2928 = vmatprep.mubr.f32.mxu1 %v4041_v15 }
 0x800   :  { %2929 = vmatmul.mubr.f32.vlgmr.msra.gmra.mrb[24].mxu1 %v4043_v34 }
 0x801   :  { %4297 = shalt.err (!%p4294_p8)
}
 0x802   :  { %s4298_s21 = scalar_lea.hbm %s4846_s12, 64 }
 0x803   :  { %p4299_p9 = scmp.ne.s32.totalorder %s4846_s12, %s4298_s21  ;;  %p4302_p10 = scmp.lt.u32.totalorder %s4298_s21, %s4846_s12 }
 0x805   :  { %p4304_p11 = pnand %p4302_p10, %p4299_p9 }
 0x807   :  { %4307 = shalt.err (!%p4304_p11)
}
 0x808   :  { %s4369_s27 = smov 32   ;;  %s4370_s9 = smov 2   ;;  %v3289_v6 = vld [vmem:[#allocation19] ss:$0 sm:$0xff] }
 0x809   :  { %3026 = dma.vmem_to_hbm [thread:$0]  %s3021_s3, 64, %s4846_s12, [#allocation22], %s4369_s27, %s4369_s27, %s4370_s9  }
 0x80a   :  { %s4371_s6 = smov [#allocation20]  }
 0x80b   :  { %s3011_s2 = sshll.u32 %s4371_s6, 4  ;;  %s3012_s2 = int_to_ptr.vmem [resolvable:$true] %s3011_s2 }
 0x80c   :  { %s4308_s15 = scalar_lea.vmem %s3012_s2, 32  ;;  %p4313_p13 = scmp.lt.s32.totalorder %s3012_s2, %s3012_s2 }
 0x80d   :  { %p4309_p12 = scmp.ne.s32.totalorder %s3012_s2, %s4308_s15  ;;  %p4314_p0 = scmp.lt.s32.totalorder %s4308_s15, %s4308_s15 }
 0x80f   :  { %p4315_p1 = por %p4314_p0, %p4313_p13 }
 0x811   :  { %p4316_p2 = pnand %p4315_p1, %p4309_p12 }
 0x8d1   :  { %v3000_v35 = vpop.f32.mrb[20].mxu0 }
 0x8d2   :  { %v3563_v16 = vpop.f32.mrb[21].mxu0 }
 0x8d3   :  { %v3429_v30 = vpop.f32.mrb[24].mxu1 }
 0x8d4   :  { %v3430_v33 = vpop.f32.mrb[25].mxu1 }
 0x8d5   :  { %v3431_v17 = vadd.f32 %v3430_v33, %v3429_v30 }
 0x8d7   :  { %v2931_v18 = vadd.f32 %v3431_v17, %v3289_v6 }
 0x8d9   :  { %v3001_v47 = vadd.f32 %v3000_v35, %v2931_v18 }
 0x8db   :  { %3004 = vst [vmem:[#allocation20] sm:$0x3] %v3001_v47 }
 0x8dc   :  { %4319 = shalt.err (!%p4316_p2)
}
 0x8dd   :  { %s4320_s28 = scalar_lea.hbm %s4845_s11, 32 }
 0x8de   :  { %p4321_p3 = scmp.ne.s32.totalorder %s4845_s11, %s4320_s28  ;;  %p4324_p4 = scmp.lt.u32.totalorder %s4320_s28, %s4845_s11 }
 0x8e0   :  { %p4326_p5 = pnand %p4324_p4, %p4321_p3 }
 0x8e2   :  { %4329 = shalt.err (!%p4326_p5)
}
 0x8e3   :  { %3014 = dma.vmem_to_hbm [thread:$0]  %s3012_s2, 32, %s4845_s11, [#allocation4]  }
 0x8e4   :  { %4342 = dma.done.wait [#allocation4], 32  }
 0x8e5   :  { %4343 = vsyncadd [#allocation4], 4294967264 }
 0x8e6   :  { %4344 = dma.done.wait [#allocation22], 64  }
 0x8e7   :  { %4345 = vsyncadd [#allocation22], 4294967232 }
 0x8e8   :  { %3033 = vsyncpa [#allocation3], 1 }
 0x8e9   :  { %3034 = vsyncpa [#allocation6], 1 }
 0x8ea   :  { %3035 = vsyncpa [#allocation9], 1 }
 0x8eb   :  { %3036 = vsyncpa [#allocation12], 1 }
 0x8ec   :  { %3037 = vsyncpa [#allocation15], 1 }
 0x8ed   :  { %3038 = vsyncpa [#allocation18], 1 }
 0x8ee   :  { %3039 = vsyncpa [#allocation4], 1 }
 0x8ef   :  { %3040 = vsyncpa [#allocation22], 1 }

</bundles_post_ra>
